<compile_context>
chip_gen: v6e
topology: v6e:2x2x1
jax: 0.10.0
libtpu: 0.0.40
codegen_flags: <defaults>
</compile_context>

<pallas_src>
import functools

import jax
import jax.numpy as jnp
from jax.experimental import pallas as pl
from jax.experimental.pallas import tpu as pltpu

LANE = 128


def _round_up(x, m):
    return (x + m - 1) // m * m


def _choose_tiling():
    """Pick (tile_m, vmem_limit_bytes) per chip generation.

    v7x has 64 MiB VMEM/TC -> keep tile_m=256 and a 48 MiB scoped limit.
    v5e/v6e have 128 MiB    -> tile_m=512 with a ~100 MiB limit (measured
    tile-size sweeps: ~85% of HBM roofline at 512 vs ~63% at 256).
    """
    tile_m, vmem_limit = 256, 48 * 1024 * 1024        # safe on every generation
    try:
        info = pltpu.get_tpu_info()
        vmem_cap = getattr(info, "vmem_capacity_bytes", None)
        if vmem_cap is not None and vmem_cap >= 100 * 1024 * 1024:
            tile_m, vmem_limit = 512, 100 * 1024 * 1024
    except Exception:
        pass
    return tile_m, vmem_limit


# ----------------------------------------------------------------------------
# Small-graph fast path: both layers + log_softmax in one VMEM-resident call
# ----------------------------------------------------------------------------
def _fused_small_kernel(a_ref, xw_ref, b1_ref, w2_ref, b2_ref, out_ref, *,
                        num_classes):
    a = a_ref[...]                                                    # [N, N] bf16
    h = jnp.dot(a, xw_ref[...], preferred_element_type=jnp.float32)  # f32 acc
    h = jnp.maximum(h + b1_ref[...], 0.0)
    # TODO(synk): training-mode dropout not wired in; identity in eval mode.
    hw = jnp.dot(h.astype(jnp.bfloat16), w2_ref[...],
                 preferred_element_type=jnp.float32)
    z = jnp.dot(a, hw.astype(jnp.bfloat16),
                preferred_element_type=jnp.float32) + b2_ref[...]
    col = jax.lax.broadcasted_iota(jnp.int32, z.shape, 1)
    z = jnp.where(col < num_classes, z, -jnp.inf)                    # mask lane pad
    m = jnp.max(z, axis=1, keepdims=True)
    lse = jnp.log(jnp.sum(jnp.exp(z - m), axis=1, keepdims=True)) + m
    out_ref[...] = z - lse


# ----------------------------------------------------------------------------
# Tiled pass 1: hw = relu(A_rows @ (xW1) + b1) @ W2      (per row tile)
# ----------------------------------------------------------------------------
def _layer1_kernel(a_ref, xw_ref, b1_ref, w2_ref, hw_ref):
    h = jnp.dot(a_ref[...], xw_ref[...], preferred_element_type=jnp.float32)
    h = jnp.maximum(h + b1_ref[...], 0.0)
    # TODO(synk): training-mode dropout not wired in; identity in eval mode.
    hw_ref[...] = jnp.dot(
        h.astype(jnp.bfloat16), w2_ref[...],
        preferred_element_type=jnp.float32).astype(hw_ref.dtype)


# ----------------------------------------------------------------------------
# Tiled pass 2: out = log_softmax(A_rows @ hw + b2)      (per row tile)
# ----------------------------------------------------------------------------
def _layer2_kernel(a_ref, hw_ref, b2_ref, out_ref, *, num_classes):
    z = jnp.dot(a_ref[...], hw_ref[...],
                preferred_element_type=jnp.float32) + b2_ref[...]
    col = jax.lax.broadcasted_iota(jnp.int32, z.shape, 1)
    z = jnp.where(col < num_classes, z, -jnp.inf)
    m = jnp.max(z, axis=1, keepdims=True)
    lse = jnp.log(jnp.sum(jnp.exp(z - m), axis=1, keepdims=True)) + m
    out_ref[...] = z - lse


# ----------------------------------------------------------------------------
# One-time preprocessing of A_hat (do NOT repeat per forward call)
# ----------------------------------------------------------------------------
def prepare_adjacency(a_hat, row_multiple=512):
    """Cast A_hat to bf16 and pad rows to a multiple of `row_multiple` once.

    Only rows are padded: the streamed A BlockSpec's last block dim equals the
    full array dim, so no column padding is required by the (8,128) rule.
    512 is a multiple of every tile_m we use (128/256/512)."""
    n = a_hat.shape[0]
    n_rows = _round_up(n, row_multiple)
    a = a_hat.astype(jnp.bfloat16)
    if n_rows != n:
        a = jnp.zeros((n_rows, n), jnp.bfloat16).at[:n, :].set(a)
    return a


# ----------------------------------------------------------------------------
# Forward wrapper
# ----------------------------------------------------------------------------
def gcn_forward(a_hat, x, w1, b1, w2, b2, *, tile_m=None, vmem_limit_bytes=None,
                use_fast_path=None):
    """a_hat: [N, N] f32 or (preferably) the output of prepare_adjacency()
    ([n_rows >= N, N] bf16, rows padded). Returns [N, C] f32 log-probs."""
    N = x.shape[0]
    if a_hat.shape[1] != N:
        raise ValueError("a_hat columns must equal number of nodes")
    H = w1.shape[1]
    C = w2.shape[1]

    auto_tile, auto_vmem = _choose_tiling()
    tile_m = auto_tile if tile_m is None else tile_m
    vmem_limit_bytes = auto_vmem if vmem_limit_bytes is None else vmem_limit_bytes

    h_pad = _round_up(H, LANE)
    c_pad = _round_up(C, LANE)

    # Hoisted prologue: xw = x @ W1 once (K = F_in is tiny and badly shaped for
    # the MXU; reused by every row tile). Zero padding is exact under GCN math.
    xw = jnp.dot(x.astype(jnp.float32), w1.astype(jnp.float32))          # [N, H]
    xw_p = jnp.zeros((N, h_pad), jnp.bfloat16).at[:, :H].set(xw.astype(jnp.bfloat16))
    b1_p = jnp.zeros((1, h_pad), jnp.float32).at[:, :H].set(
        b1.reshape(1, -1).astype(jnp.float32))
    w2_p = jnp.zeros((h_pad, c_pad), jnp.bfloat16).at[:H, :C].set(
        w2.astype(jnp.bfloat16))
    b2_p = jnp.zeros((1, c_pad), jnp.float32).at[:, :C].set(
        b2.reshape(1, -1).astype(jnp.float32))

    a_bf = a_hat if a_hat.dtype == jnp.bfloat16 else a_hat.astype(jnp.bfloat16)

    # --- small-graph fast path decision (rough in-kernel VMEM estimate) ---
    est_bytes = (N * N * 2 + N * h_pad * 6 + N * c_pad * 10 + h_pad * c_pad * 2)
    use_fast = (est_bytes <= vmem_limit_bytes // 2) if use_fast_path is None \
        else use_fast_path

    if use_fast:
        a_sq = a_bf[:N, :] if a_bf.shape[0] != N else a_bf   # drop padded rows
        out_p = pl.pallas_call(
            functools.partial(_fused_small_kernel, num_classes=C),
            out_shape=jax.ShapeDtypeStruct((N, c_pad), jnp.float32),
            compiler_params=pltpu.CompilerParams(
                vmem_limit_bytes=vmem_limit_bytes),
        )(a_sq, xw_p, b1_p, w2_p, b2_p)
        return out_p[:, :C]

    # --- tiled two-pass streaming path (large graphs) ---
    n_rows = a_bf.shape[0]
    if n_rows % tile_m != 0:
        new_rows = _round_up(n_rows, tile_m)
        a_bf = jnp.zeros((new_rows, N), jnp.bfloat16).at[:n_rows, :].set(a_bf)
        n_rows = new_rows
    grid = (n_rows // tile_m,)

    def run(single_buffer):
        def resident(shape):
            # Constant-index resident operands never change block index; a
            # second pipeline buffer would be pure VMEM waste (matters on v7x).
            if single_buffer:
                return pl.BlockSpec(shape, lambda i: (0, 0),
                                    pipeline_mode=pl.Buffered(1))
            return pl.BlockSpec(shape, lambda i: (0, 0))

        cparams = pltpu.CompilerParams(
            dimension_semantics=("parallel",),       # row tiles independent
            vmem_limit_bytes=vmem_limit_bytes,
        )

        # Pass 1: hw = relu(A_rows @ xw + b1) @ W2
        hw = pl.pallas_call(
            _layer1_kernel,
            out_shape=jax.ShapeDtypeStruct((n_rows, c_pad), jnp.bfloat16),
            grid=grid,
            in_specs=[
                pl.BlockSpec((tile_m, N), lambda i: (i, 0)),   # streamed A slab
                resident((N, h_pad)),                          # xw   (resident)
                resident((1, h_pad)),                          # b1   (resident)
                resident((h_pad, c_pad)),                      # W2   (resident)
            ],
            out_specs=pl.BlockSpec((tile_m, c_pad), lambda i: (i, 0)),
            compiler_params=cparams,
        )(a_bf, xw_p, b1_p, w2_p)

        # Drop padded hw rows so pass-2 contraction dim == N (tiny XLA copy).
        hw_n = hw[:N]

        # Pass 2: out = log_softmax(A_rows @ hw + b2)
        out_p = pl.pallas_call(
            functools.partial(_layer2_kernel, num_classes=C),
            out_shape=jax.ShapeDtypeStruct((n_rows, c_pad), jnp.float32),
            grid=grid,
            in_specs=[
                pl.BlockSpec((tile_m, N), lambda i: (i, 0)),   # streamed A slab
                resident((N, c_pad)),                          # hw   (resident)
                resident((1, c_pad)),                          # b2   (resident)
            ],
            out_specs=pl.BlockSpec((tile_m, c_pad), lambda i: (i, 0)),
            compiler_params=cparams,
        )(a_bf, hw_n, b2_p)

        return out_p[:N, :C]

    try:
        return run(single_buffer=True)
    except Exception:
        # pipeline_mode=pl.Buffered(1) not accepted by this jax/Mosaic version:
        # fall back to the default double-buffered resident specs.
        return run(single_buffer=False)


# ----------------------------------------------------------------------------
# Glue: GCN normalized adjacency from edge_index (plain JAX preprocessing)
# ----------------------------------------------------------------------------
def normalized_adjacency(edge_index, num_nodes):
    """Dense A_hat = D^{-1/2} (A + I) D^{-1/2} matching PyG gcn_norm defaults:
    duplicate edges accumulate (scatter-add) and self-loops are only added to
    nodes that do not already have one."""
    src, dst = edge_index[0], edge_index[1]
    a = jnp.zeros((num_nodes, num_nodes), jnp.float32)
    a = a.at[src, dst].add(1.0)
    diag = jnp.diagonal(a)
    a = a + jnp.diag(jnp.where(diag > 0.0, 0.0, 1.0))
    deg = jnp.sum(a, axis=1)
    d_inv_sqrt = jnp.where(deg > 0, jax.lax.rsqrt(deg), 0.0)
    return a * d_inv_sqrt[:, None] * d_inv_sqrt[None, :]


def glorot(key, shape):
    limit = jnp.sqrt(6.0 / (shape[0] + shape[1]))
    return jax.random.uniform(key, shape, jnp.float32, -limit, limit)


def gcn_reference(a_hat, x, w1, b1, w2, b2):
    h = jnp.maximum(a_hat @ (x @ w1) + b1, 0.0)
    z = a_hat @ (h @ w2) + b2
    return jax.nn.log_softmax(z, axis=1)


if __name__ == "__main__":
    # Small synthetic "Pubmed-like" graph.
    N = 256            # nodes
    F_IN = 16          # input feature dim (X.shape[1])
    HIDDEN = 64        # conv1 output dim
    NO_OF_CLASSES = 3  # len(set(labels))
    NUM_EDGES = 512

    key = jax.random.PRNGKey(0)
    k_x, k_e, k_w1, k_w2 = jax.random.split(key, 4)

    x = jax.random.normal(k_x, (N, F_IN), jnp.float32)
    e = jax.random.randint(k_e, (2, NUM_EDGES), 0, N)
    edge_index = jnp.concatenate([e, e[::-1]], axis=1)   # symmetrized / undirected

    w1 = glorot(k_w1, (F_IN, HIDDEN))
    b1 = jnp.zeros((1, HIDDEN), jnp.float32)
    w2 = glorot(k_w2, (HIDDEN, NO_OF_CLASSES))
    b2 = jnp.zeros((1, NO_OF_CLASSES), jnp.float32)

    a_hat = normalized_adjacency(edge_index, N)
    a_prep = prepare_adjacency(a_hat)            # one-time bf16 cast + row pad

    ref = gcn_reference(a_hat, x, w1, b1, w2, b2)

    # 1) Fully-resident fused fast path (what small graphs auto-select).
    out_fast = jax.block_until_ready(
        gcn_forward(a_prep, x, w1, b1, w2, b2, use_fast_path=True))
    # 2) Tiled two-pass streaming path (what Pubmed-scale graphs use); tile_m
    #    forced small here only so the demo exercises multiple grid steps.
    out_tiled = jax.block_until_ready(
        gcn_forward(a_prep, x, w1, b1, w2, b2, use_fast_path=False, tile_m=128))

    for out in (out_fast, out_tiled):
        assert out.shape == (N, NO_OF_CLASSES)
        # log_softmax rows must sum (in prob space) to 1.
        row_sums = jnp.sum(jnp.exp(out), axis=1)
        assert bool(jnp.all(jnp.abs(row_sums - 1.0) < 1e-3))
        # Loose check against an f32 pure-JAX reference (kernel uses bf16 inputs).
        assert bool(jnp.max(jnp.abs(out - ref)) < 0.1)

    print("KERNEL_OK")
</pallas_src>

<mosaic_0001>
module attributes {stable_mosaic.version = 11 : i64} {
  func.func @_fused_small_kernel(%arg0: memref<256x256xbf16, #tpu.memory_space<vmem>>, %arg1: memref<256x128xbf16, #tpu.memory_space<vmem>>, %arg2: memref<1x128xf32, #tpu.memory_space<vmem>>, %arg3: memref<128x128xbf16, #tpu.memory_space<vmem>>, %arg4: memref<1x128xf32, #tpu.memory_space<vmem>>, %arg5: memref<256x128xf32, #tpu.memory_space<vmem>>) attributes {dimension_semantics = [], scalar_prefetch = 0 : i64, scratch_operands = 0 : i64, tpu.core_type = #tpu.core_type<tc>} {
    %c0 = arith.constant 0 : index
    %c0_0 = arith.constant 0 : index
    %0 = vector.load %arg0[%c0, %c0_0] : memref<256x256xbf16, #tpu.memory_space<vmem>>, vector<256x256xbf16>
    %c0_1 = arith.constant 0 : index
    %c0_2 = arith.constant 0 : index
    %1 = vector.load %arg1[%c0_1, %c0_2] : memref<256x128xbf16, #tpu.memory_space<vmem>>, vector<256x128xbf16>
    %cst = arith.constant dense<0.000000e+00> : vector<256x128xf32>
    %2 = tpu.matmul %0, %1, %cst {dimension_numbers = #tpu.dot_dimension_numbers<[1], [0], [0], [1], [0, 0, 1, 1], [], []>} : vector<256x256xbf16>, vector<256x128xbf16>, vector<256x128xf32> -> vector<256x128xf32>
    %c0_3 = arith.constant 0 : index
    %c0_4 = arith.constant 0 : index
    %3 = vector.load %arg2[%c0_3, %c0_4] : memref<1x128xf32, #tpu.memory_space<vmem>>, vector<1x128xf32>
    %4 = vector.broadcast %3 : vector<1x128xf32> to vector<256x128xf32>
    %5 = arith.addf %2, %4 : vector<256x128xf32>
    %cst_5 = arith.constant 0.000000e+00 : f32
    %6 = vector.broadcast %cst_5 : f32 to vector<256x128xf32>
    %7 = arith.maximumf %5, %6 : vector<256x128xf32>
    %8 = arith.truncf %7 : vector<256x128xf32> to vector<256x128xbf16>
    %c0_6 = arith.constant 0 : index
    %c0_7 = arith.constant 0 : index
    %9 = vector.load %arg3[%c0_6, %c0_7] : memref<128x128xbf16, #tpu.memory_space<vmem>>, vector<128x128xbf16>
    %cst_8 = arith.constant dense<0.000000e+00> : vector<256x128xf32>
    %10 = tpu.matmul %8, %9, %cst_8 {dimension_numbers = #tpu.dot_dimension_numbers<[1], [0], [0], [1], [0, 0, 1, 1], [], []>} : vector<256x128xbf16>, vector<128x128xbf16>, vector<256x128xf32> -> vector<256x128xf32>
    %11 = arith.truncf %10 : vector<256x128xf32> to vector<256x128xbf16>
    %cst_9 = arith.constant dense<0.000000e+00> : vector<256x128xf32>
    %12 = tpu.matmul %0, %11, %cst_9 {dimension_numbers = #tpu.dot_dimension_numbers<[1], [0], [0], [1], [0, 0, 1, 1], [], []>} : vector<256x256xbf16>, vector<256x128xbf16>, vector<256x128xf32> -> vector<256x128xf32>
    %c0_10 = arith.constant 0 : index
    %c0_11 = arith.constant 0 : index
    %13 = vector.load %arg4[%c0_10, %c0_11] : memref<1x128xf32, #tpu.memory_space<vmem>>, vector<1x128xf32>
    %14 = vector.broadcast %13 : vector<1x128xf32> to vector<256x128xf32>
    %15 = arith.addf %12, %14 : vector<256x128xf32>
    %16 = tpu.iota {dimensions = array<i32: 1>} : vector<256x128xi32>
    %c3_i32 = arith.constant 3 : i32
    %17 = vector.broadcast %c3_i32 : i32 to vector<256x128xi32>
    %18 = arith.cmpi slt, %16, %17 : vector<256x128xi32>
    %cst_12 = arith.constant 0xFF800000 : f32
    %19 = vector.broadcast %cst_12 : f32 to vector<256x128xf32>
    %20 = arith.select %18, %15, %19 : vector<256x128xi1>, vector<256x128xf32>
    %cst_13 = arith.constant dense<0xFF800000> : vector<256xf32>
    %21 = vector.multi_reduction <maximumf>, %20, %cst_13 [1] : vector<256x128xf32> to vector<256xf32>
    %22 = vector.shape_cast %21 : vector<256xf32> to vector<256x1xf32>
    %23 = vector.broadcast %22 : vector<256x1xf32> to vector<256x128xf32>
    %24 = arith.subf %20, %23 : vector<256x128xf32>
    %25 = math.exp %24 : vector<256x128xf32>
    %cst_14 = arith.constant dense<0.000000e+00> : vector<256xf32>
    %26 = vector.multi_reduction <add>, %25, %cst_14 [1] : vector<256x128xf32> to vector<256xf32>
    %27 = vector.shape_cast %26 : vector<256xf32> to vector<256x1xf32>
    %28 = math.log %27 : vector<256x1xf32>
    %29 = arith.addf %28, %22 : vector<256x1xf32>
    %30 = vector.broadcast %29 : vector<256x1xf32> to vector<256x128xf32>
    %31 = arith.subf %20, %30 : vector<256x128xf32>
    %c0_15 = arith.constant 0 : index
    %c0_16 = arith.constant 0 : index
    %32 = vector.load %arg5[%c0_15, %c0_16] : memref<256x128xf32, #tpu.memory_space<vmem>>, vector<256x128xf32>
    tpu.vector_store %arg5[%c0_15, %c0_16], %31 {strides = array<i32>} : memref<256x128xf32, #tpu.memory_space<vmem>>, vector<256x128xf32>,
    return
  }
}

</mosaic_0001>

<bundles_post_ra>
// kernel: tpu_custom_call.1
= control target key start
LH: loop header
LB: loop body
LE: loop exit
PB: predicated region body
PF: predicated region fallthrough
CT: control target
= control target key end

     0   :  { %10 = vsyncpa [#allocation3], 0  ;;  %s2722_s0 = inlined_call_operand.hbm [shape: bf16[256,256], index: 0, kind: input, shape index: {}]   ;;  %s2723_s1 = inlined_call_operand.hbm [shape: bf16[256,128], index: 1, kind: input, shape index: {}]   ;;  %s2724_s2 = inlined_call_operand.vmem [shape: f32[1,128], index: 2, kind: input, shape index: {}]   ;;  %s2725_s3 = inlined_call_operand.hbm [shape: bf16[128,128], index: 3, kind: input, shape index: {}]   ;;  %s2726_s4 = inlined_call_operand.vmem [shape: f32[1,128], index: 4, kind: input, shape index: {}]   ;;  %s2727_s5 = inlined_call_operand.hbm [shape: f32[256,128], index: 5, kind: output, shape index: {}]  }
   0x1   :  { %11 = vsyncpa [#allocation6], 0 }
   0x2   :  { %12 = vsyncpa [#allocation4], 0  ;;  %s2109_s18 = smov [#allocation5]  }
   0x3   :  { %s30_s19 = sshll.u32 %s2109_s18, 4  ;;  %s31_s19 = int_to_ptr.vmem [resolvable:$true] %s30_s19 }
   0x4   :  { %s2031_s20 = scalar_lea.vmem %s31_s19, 2048  ;;  %p2036_p1 = scmp.lt.s32.totalorder %s31_s19, %s31_s19 }
   0x5   :  { %p2032_p0 = scmp.ne.s32.totalorder %s31_s19, %s2031_s20  ;;  %p2037_p2 = scmp.lt.s32.totalorder %s2031_s20, %s2031_s20 }
   0x7   :  { %p2038_p3 = por %p2037_p2, %p2036_p1 }
   0x9   :  { %p2039_p4 = pnand %p2038_p3, %p2032_p0 }
   0xb   :  { %2042 = shalt.err (!%p2039_p4)
}
   0xc   :  { %s2110_s21 = smov 64   ;;  %s2111_s22 = smov 4  }
   0xd   :  { %36 = dma.hbm_to_vmem [thread:$0]  %s2723_s1, 2048, %s31_s19, [#allocation6], %s2110_s21, %s2110_s21, %s2111_s22  }
   0xe   :  { %s2112_s25 = smov [#allocation2]  }
   0xf   :  { %s18_s26 = sshll.u32 %s2112_s25, 4  ;;  %s19_s26 = int_to_ptr.vmem [resolvable:$true] %s18_s26 }
  0x10   :  { %s2051_s27 = scalar_lea.vmem %s19_s26, 4096  ;;  %p2056_p6 = scmp.lt.s32.totalorder %s19_s26, %s19_s26 }
  0x11   :  { %p2052_p5 = scmp.ne.s32.totalorder %s19_s26, %s2051_s27  ;;  %p2057_p7 = scmp.lt.s32.totalorder %s2051_s27, %s2051_s27 }
  0x13   :  { %p2058_p8 = por %p2057_p7, %p2056_p6 }
  0x15   :  { %p2059_p9 = pnand %p2058_p8, %p2052_p5 }
  0x17   :  { %2062 = shalt.err (!%p2059_p9)
}
  0x18   :  { %s2113_s28 = smov 128   ;;  %s2114_s29 = smov 8  }
  0x19   :  { %24 = dma.hbm_to_vmem [thread:$0]  %s2722_s0, 4096, %s19_s26, [#allocation3], %s2113_s28, %s2113_s28, %s2114_s29  }
  0x1a   :  { %s2115_s1 = smov [#allocation7]  }
  0x1b   :  { %s44_s7 = sshll.u32 %s2115_s1, 4  ;;  %s45_s7 = int_to_ptr.vmem [resolvable:$true] %s44_s7 }
  0x1c   :  { %s2071_s8 = scalar_lea.vmem %s45_s7, 1024  ;;  %p2076_p11 = scmp.lt.s32.totalorder %s45_s7, %s45_s7 }
  0x1d   :  { %p2072_p10 = scmp.ne.s32.totalorder %s45_s7, %s2071_s8  ;;  %p2077_p12 = scmp.lt.s32.totalorder %s2071_s8, %s2071_s8 }
  0x1f   :  { %p2078_p13 = por %p2077_p12, %p2076_p11 }
  0x21   :  { %p2079_p0 = pnand %p2078_p13, %p2072_p10 }
  0x23   :  { %2082 = shalt.err (!%p2079_p0)
}
  0x24   :  { %50 = dma.hbm_to_vmem [thread:$0]  %s2725_s3, 1024, %s45_s7, [#allocation6], %s2110_s21, %s2110_s21, %s2111_s22  }
  0x25   :  { %2103 = dma.done.wait [#allocation3], 4096  }
  0x26   :  { %2104 = vsyncadd [#allocation3], 4294963200 }
  0x27   :  { %2105 = dma.done.wait [#allocation6], 3072  }
  0x28   :  { %2106 = vsyncadd [#allocation6], 4294964224  ;;  %v1823_v0 = vld [vmem:[#allocation5 + $0x78] sm:$0xff]   ;;  %v1825_v2 = vld [vmem:[#allocation5 + $0x70] sm:$0xff]  }
  0x29   :  { %v1824_v1 = vld [vmem:[#allocation5 + $0x38] sm:$0xff]   ;;  %1503 = vmatprep.subr.bf16.mxu0 %v1823_v0  ;;  %v1826_v3 = vld [vmem:[#allocation5 + $0x30] sm:$0xff]   ;;  %v1827_v4 = vld [vmem:[#allocation5 + $0x68] sm:$0xff]  }
  0x2a   :  { %1504 = vmatpush3.bf16.msra.mxu0 %v1824_v1  ;;  %v1828_v5 = vld [vmem:[#allocation5 + $0x28] sm:$0xff]   ;;  %v1829_v6 = vld [vmem:[#allocation5 + $0x60] sm:$0xff]   ;;  %v1831_v8 = vld [vmem:[#allocation5 + $0x58] sm:$0xff]  }
  0x2b   :  { %1505 = vmatprep.subr.bf16.mxu0 %v1825_v2  ;;  %v1830_v7 = vld [vmem:[#allocation5 + $0x20] sm:$0xff]   ;;  %v1832_v9 = vld [vmem:[#allocation5 + $0x18] sm:$0xff]   ;;  %v1833_v10 = vld [vmem:[#allocation5 + $0x50] sm:$0xff]  }
  0x2c   :  { %v2159_v11 = vld [vmem:[#allocation2 + $0x4] ss:$8 sps:$4 sm:$0xff]   ;;  %v1834_v12 = vld [vmem:[#allocation5 + $0x10] sm:$0xff]   ;;  %v2162_v17 = vld [vmem:[#allocation2] ss:$8 sps:$4 sm:$0xff]  }
  0x2d   :  { %422 = vmatprep.mubr.bf16.mxu0 %v2159_v11  ;;  %v1835_v13 = vld [vmem:[#allocation5 + $0x48] sm:$0xff]   ;;  %v1837_v15 = vld [vmem:[#allocation5 + $0x40] sm:$0xff]   ;;  %v2164_v18 = vld [vmem:[#allocation2 + $0x14] ss:$8 sps:$4 sm:$0xff]  }
  0x2e   :  { %1506 = vmatpush3.bf16.msra.mxu0 %v1826_v3  ;;  %v1836_v14 = vld [vmem:[#allocation5 + $0x8] sm:$0xff]   ;;  %v1838_v16 = vld [vmem:[#allocation5] sm:$0xff]   ;;  %v2168_v19 = vld [vmem:[#allocation2 + $0x10] ss:$8 sps:$4 sm:$0xff]  }
  0x2f   :  { %1507 = vmatprep.subr.bf16.mxu0 %v1827_v4  ;;  %v2170_v20 = vld [vmem:[#allocation2 + $0x24] ss:$8 sps:$4 sm:$0xff]   ;;  %v1887_v21 = vld [vmem:[#allocation7 + $0x38] sm:$0xff]   ;;  %v1888_v22 = vld [vmem:[#allocation7 + $0x30] sm:$0xff]  }
  0x30   :  { %v1889_v23 = vld [vmem:[#allocation7 + $0x28] sm:$0xff]   ;;  %1799 = vmatprep.subr.bf16.mxu1 %v1887_v21  ;;  %v2176_v25 = vld [vmem:[#allocation2 + $0x34] ss:$8 sps:$4 sm:$0xff]   ;;  %v2180_v26 = vld [vmem:[#allocation2 + $0x30] ss:$8 sps:$4 sm:$0xff]  }
  0x31   :  { %1807 = vmatpush3.bf16.msra.mxu1 %v1887_v21  ;;  %v2174_v24 = vld [vmem:[#allocation2 + $0x20] ss:$8 sps:$4 sm:$0xff]   ;;  %v2182_v27 = vld [vmem:[#allocation2 + $0x44] ss:$8 sps:$4 sm:$0xff]   ;;  %v2188_v29 = vld [vmem:[#allocation2 + $0x54] ss:$8 sps:$4 sm:$0xff]  }
  0x32   :  { %1508 = vmatpush3.bf16.msra.mxu0 %v1828_v5  ;;  %1800 = vmatprep.subr.bf16.mxu1 %v1888_v22  ;;  %v2186_v28 = vld [vmem:[#allocation2 + $0x40] ss:$8 sps:$4 sm:$0xff]   ;;  %v2192_v30 = vld [vmem:[#allocation2 + $0x50] ss:$8 sps:$4 sm:$0xff]   ;;  %v2194_v31 = vld [vmem:[#allocation2 + $0x64] ss:$8 sps:$4 sm:$0xff]  }
  0x33   :  { %1509 = vmatprep.subr.bf16.mxu0 %v1829_v6  ;;  %v2198_v32 = vld [vmem:[#allocation2 + $0x60] ss:$8 sps:$4 sm:$0xff]   ;;  %v2200_v33 = vld [vmem:[#allocation2 + $0x74] ss:$8 sps:$4 sm:$0xff]   ;;  %v2204_v34 = vld [vmem:[#allocation2 + $0x70] ss:$8 sps:$4 sm:$0xff]  }
  0x34   :  { %v2206_v35 = vld [vmem:[#allocation2 + $0x84] ss:$8 sps:$4 sm:$0xff]   ;;  %v2210_v36 = vld [vmem:[#allocation2 + $0x80] ss:$8 sps:$4 sm:$0xff]   ;;  %v2212_v37 = vld [vmem:[#allocation2 + $0x94] ss:$8 sps:$4 sm:$0xff]  }
  0x35   :  { %1808 = vmatpush3.bf16.msra.mxu1 %v1888_v22  ;;  %v1890_v38 = vld [vmem:[#allocation7 + $0x20] sm:$0xff]   ;;  %v2216_v39 = vld [vmem:[#allocation2 + $0x90] ss:$8 sps:$4 sm:$0xff]   ;;  %v2224_v44 = vld [vmem:[#allocation2 + $0xb4] ss:$8 sps:$4 sm:$0xff]  }
  0x36   :  { %1510 = vmatpush3.bf16.msra.mxu0 %v1830_v7  ;;  %1801 = vmatprep.subr.bf16.mxu1 %v1889_v23  ;;  %v2218_v40 = vld [vmem:[#allocation2 + $0xa4] ss:$8 sps:$4 sm:$0xff]   ;;  %v1891_v41 = vld [vmem:[#allocation7 + $0x18] sm:$0xff]   ;;  %v1892_v42 = vld [vmem:[#allocation7 + $0x10] sm:$0xff]  }
  0x37   :  { %1511 = vmatprep.subr.bf16.mxu0 %v1831_v8  ;;  %v2222_v43 = vld [vmem:[#allocation2 + $0xa0] ss:$8 sps:$4 sm:$0xff]   ;;  %v2228_v47 = vld [vmem:[#allocation2 + $0xb0] ss:$8 sps:$4 sm:$0xff]   ;;  %v2230_v48 = vld [vmem:[#allocation2 + $0xc4] ss:$8 sps:$4 sm:$0xff]  }
  0x38   :  { %v1893_v45 = vld [vmem:[#allocation7 + $0x8] sm:$0xff]   ;;  %v1894_v46 = vld [vmem:[#allocation7] sm:$0xff]   ;;  %2749 = vst [vmem:[#allocation12_spill] sm:$0xff] %v2230_v48  ;;  %v2236_v50 = vld [vmem:[#allocation2 + $0xd4] ss:$8 sps:$4 sm:$0xff]  }
  0x39   :  { %1809 = vmatpush3.bf16.msra.mxu1 %v1889_v23  ;;  %v2234_v49 = vld [vmem:[#allocation2 + $0xc0] ss:$8 sps:$4 sm:$0xff]   ;;  %2751 = vst [vmem:[#allocation14_spill] sm:$0xff] %v2236_v50  ;;  %v2240_v51 = vld [vmem:[#allocation2 + $0xd0] ss:$8 sps:$4 sm:$0xff]  }
  0x3a   :  { %1512 = vmatpush3.bf16.msra.mxu0 %v1832_v9  ;;  %1802 = vmatprep.subr.bf16.mxu1 %v1890_v38  ;;  %2750 = vst [vmem:[#allocation13_spill] sm:$0xff] %v2234_v49  ;;  %2752 = vst [vmem:[#allocation15_spill] sm:$0xff] %v2240_v51  ;;  %v2242_v52 = vld [vmem:[#allocation2 + $0xe4] ss:$8 sps:$4 sm:$0xff]   ;;  %v2246_v53 = vld [vmem:[#allocation2 + $0xe0] ss:$8 sps:$4 sm:$0xff]  }
  0x3b   :  { %1513 = vmatprep.subr.bf16.mxu0 %v1833_v10  ;;  %2753 = vst [vmem:[#allocation16_spill] sm:$0xff] %v2242_v52  ;;  %2754 = vst [vmem:[#allocation17_spill] sm:$0xff] %v2246_v53  ;;  %v2248_v54 = vld [vmem:[#allocation2 + $0xf4] ss:$8 sps:$4 sm:$0xff]   ;;  %v2252_v55 = vld [vmem:[#allocation2 + $0xf0] ss:$8 sps:$4 sm:$0xff]  }
  0x3c   :  { %2755 = vst [vmem:[#allocation18_spill] sm:$0xff] %v2248_v54  ;;  %2756 = vst [vmem:[#allocation19_spill] sm:$0xff] %v2252_v55  ;;  %v2258_v59 = vld [vmem:[%s2724_s2] ss:$0 sm:$0xff] }
  0x3d   :  { %1810 = vmatpush3.bf16.msra.mxu1 %v1890_v38 }
  0x3e   :  { %1514 = vmatpush3.bf16.msra.mxu0 %v1834_v12  ;;  %1803 = vmatprep.subr.bf16.mxu1 %v1891_v41 }
  0x3f   :  { %1515 = vmatprep.subr.bf16.mxu0 %v1835_v13 }
  0x41   :  { %1811 = vmatpush3.bf16.msra.mxu1 %v1891_v41 }
  0x42   :  { %1516 = vmatpush3.bf16.msra.mxu0 %v1836_v14  ;;  %1804 = vmatprep.subr.bf16.mxu1 %v1892_v42 }
  0x43   :  { %1517 = vmatprep.subr.bf16.mxu0 %v1837_v15 }
  0x45   :  { %1812 = vmatpush3.bf16.msra.mxu1 %v1892_v42 }
  0x46   :  { %1518 = vmatpush3.bf16.msra.mxu0 %v1838_v16  ;;  %1805 = vmatprep.subr.bf16.mxu1 %v1893_v45 }
  0x47   :  { %1751 = vmatprep.subr.bf16.mxu0 %v1887_v21 }
  0x49   :  { %423 = vmatmul.mubr.bf16.vlgmr.msra.gmra.mxu0 %v2162_v17  ;;  %1813 = vmatpush3.bf16.msra.mxu1 %v1893_v45 }
  0x4a   :  { %430 = vmatprep.mubr.bf16.mxu0 %v2164_v18  ;;  %1752 = vmatpush3.bf16.msra.mxu0 %v1887_v21 }
  0x4b   :  { %1753 = vmatprep.subr.bf16.mxu0 %v1888_v22  ;;  %1806 = vmatprep.subr.bf16.mxu1 %v1894_v46 }
  0x4d   :  { %1814 = vmatpush3.bf16.msra.mxu1 %v1894_v46 }
  0x4e   :  { %1754 = vmatpush3.bf16.msra.mxu0 %v1888_v22 }
  0x4f   :  { %1755 = vmatprep.subr.bf16.mxu0 %v1889_v23 }
  0x51   :  { %431 = vmatmul.mubr.bf16.gmra.mxu0 %v2168_v19 }
  0x52   :  { %438 = vmatprep.mubr.bf16.mxu0 %v2170_v20  ;;  %1756 = vmatpush3.bf16.msra.mxu0 %v1889_v23 }
  0x53   :  { %1757 = vmatprep.subr.bf16.mxu0 %v1890_v38 }
  0x56   :  { %1758 = vmatpush3.bf16.msra.mxu0 %v1890_v38 }
  0x57   :  { %1759 = vmatprep.subr.bf16.mxu0 %v1891_v41 }
  0x59   :  { %439 = vmatmul.mubr.bf16.gmra.mxu0 %v2174_v24 }
  0x5a   :  { %446 = vmatprep.mubr.bf16.mxu0 %v2176_v25  ;;  %1760 = vmatpush3.bf16.msra.mxu0 %v1891_v41 }
  0x5b   :  { %1761 = vmatprep.subr.bf16.mxu0 %v1892_v42 }
  0x5e   :  { %1762 = vmatpush3.bf16.msra.mxu0 %v1892_v42 }
  0x5f   :  { %1763 = vmatprep.subr.bf16.mxu0 %v1893_v45 }
  0x61   :  { %447 = vmatmul.mubr.bf16.gmra.mxu0 %v2180_v26 }
  0x62   :  { %454 = vmatprep.mubr.bf16.mxu0 %v2182_v27  ;;  %1764 = vmatpush3.bf16.msra.mxu0 %v1893_v45 }
  0x63   :  { %1765 = vmatprep.subr.bf16.mxu0 %v1894_v46 }
  0x66   :  { %1766 = vmatpush3.bf16.msra.mxu0 %v1894_v46 }
  0x69   :  { %455 = vmatmul.mubr.bf16.gmra.mxu0 %v2186_v28 }
  0x6a   :  { %462 = vmatprep.mubr.bf16.mxu0 %v2188_v29 }
  0x71   :  { %463 = vmatmul.mubr.bf16.gmra.mxu0 %v2192_v30 }
  0x72   :  { %470 = vmatprep.mubr.bf16.mxu0 %v2194_v31 }
  0x79   :  { %471 = vmatmul.mubr.bf16.gmra.mxu0 %v2198_v32 }
  0x7a   :  { %478 = vmatprep.mubr.bf16.mxu0 %v2200_v33 }
  0x81   :  { %479 = vmatmul.mubr.bf16.gmra.mxu0 %v2204_v34 }
  0x82   :  { %486 = vmatprep.mubr.bf16.mxu0 %v2206_v35 }
  0x89   :  { %487 = vmatmul.mubr.bf16.gmra.mxu0 %v2210_v36 }
  0x8a   :  { %494 = vmatprep.mubr.bf16.mxu0 %v2212_v37 }
  0x91   :  { %495 = vmatmul.mubr.bf16.gmra.mxu0 %v2216_v39 }
  0x92   :  { %502 = vmatprep.mubr.bf16.mxu0 %v2218_v40 }
  0x99   :  { %503 = vmatmul.mubr.bf16.gmra.mxu0 %v2222_v43 }
  0x9a   :  { %510 = vmatprep.mubr.bf16.mxu0 %v2224_v44 }
  0xa1   :  { %511 = vmatmul.mubr.bf16.gmra.mxu0 %v2228_v47 }
  0xa2   :  { %518 = vmatprep.mubr.bf16.mxu0 %v2230_v48 }
  0xa9   :  { %519 = vmatmul.mubr.bf16.gmra.mxu0 %v2234_v49 }
  0xaa   :  { %526 = vmatprep.mubr.bf16.mxu0 %v2236_v50 }
  0xb1   :  { %527 = vmatmul.mubr.bf16.gmra.mxu0 %v2240_v51 }
  0xb2   :  { %534 = vmatprep.mubr.bf16.mxu0 %v2242_v52 }
  0xb9   :  { %535 = vmatmul.mubr.bf16.gmra.mxu0 %v2246_v53 }
  0xba   :  { %542 = vmatprep.mubr.bf16.mxu0 %v2248_v54 }
  0xc1   :  { %543 = vmatmul.mubr.bf16.gmra.mxu0 %v2252_v55 }
 0x109   :  { %v1519_v56 = vpop.f32.mrf.mxu0 }
 0x10b   :  { %v1520_v57 = vpop.f32.mrf.mxu0 }
 0x10c   :  { %v1521_v58 = vadd.f32 %v1520_v57, %v1519_v56 }
 0x10d   :  { %v1522_v60 = vpop.f32.mrf.mxu0 }
 0x10e   :  { %v425_v62 = vadd.f32 %v1521_v58, %v2258_v59 }
 0x10f   :  { %v1523_v61 = vpop.f32.mrf.mxu0 }
 0x110   :  { %v1524_v63 = vadd.f32 %v1523_v61, %v1522_v60  ;;  %v551_v3 = vmax.f32 %v425_v62, 0.0 }
 0x111   :  { %v1525_v0 = vpop.f32.mrf.mxu0 }
 0x112   :  { %v428_v1 = vadd.f32 %v1524_v63, %v2258_v59 }
 0x113   :  { %v1526_v2 = vpop.f32.mrf.mxu0 }
 0x114   :  { %v552_v4 = vmax.f32 %v428_v1, 0.0  ;;  %v1527_v5 = vadd.f32 %v1526_v2, %v1525_v0 }
 0x115   :  { %v1528_v6 = vpop.f32.mrf.mxu0 }
 0x116   :  { %v583_v7 = vpack.c.bf16 %v552_v4, %v551_v3  ;;  %v433_v9 = vadd.f32 %v1527_v5, %v2258_v59 }
 0x117   :  { %v1529_v8 = vpop.f32.mrf.mxu0 }
 0x118   :  { %v1530_v10 = vadd.f32 %v1529_v8, %v1528_v6  ;;  %1767 = vmatprep.mubr.bf16.mxu0 %v583_v7  ;;  %v553_v15 = vmax.f32 %v433_v9, 0.0 }
 0x119   :  { %v1531_v12 = vpop.f32.mrf.mxu0 }
 0x11a   :  { %v436_v13 = vadd.f32 %v1530_v10, %v2258_v59 }
 0x11b   :  { %v1532_v14 = vpop.f32.mrf.mxu0 }
 0x11c   :  { %v554_v16 = vmax.f32 %v436_v13, 0.0  ;;  %v1533_v21 = vadd.f32 %v1532_v14, %v1531_v12 }
 0x11d   :  { %v1534_v22 = vpop.f32.mrf.mxu0 }
 0x11e   :  { %v584_v23 = vpack.c.bf16 %v554_v16, %v553_v15  ;;  %v441_v41 = vadd.f32 %v1533_v21, %v2258_v59 }
 0x11f   :  { %v1535_v38 = vpop.f32.mrf.mxu0 }
 0x120   :  { %v1536_v42 = vadd.f32 %v1535_v38, %v1534_v22  ;;  %1768 = vmatmul.mubr.bf16.vlgmr.msra.gmra.mxu0 %v584_v23  ;;  %v555_v57 = vmax.f32 %v441_v41, 0.0 }
 0x121   :  { %v1537_v45 = vpop.f32.mrf.mxu0 }
 0x122   :  { %v444_v46 = vadd.f32 %v1536_v42, %v2258_v59 }
 0x123   :  { %v1538_v56 = vpop.f32.mrf.mxu0 }
 0x124   :  { %v556_v58 = vmax.f32 %v444_v46, 0.0  ;;  %v1539_v60 = vadd.f32 %v1538_v56, %v1537_v45 }
 0x125   :  { %v1540_v61 = vpop.f32.mrf.mxu0 }
 0x126   :  { %v585_v62 = vpack.c.bf16 %v556_v58, %v555_v57  ;;  %v449_v0 = vadd.f32 %v1539_v60, %v2258_v59 }
 0x127   :  { %v1541_v63 = vpop.f32.mrf.mxu0 }
 0x128   :  { %v1542_v1 = vadd.f32 %v1541_v63, %v1540_v61  ;;  %1771 = vmatprep.mubr.bf16.mxu0 %v585_v62  ;;  %v557_v5 = vmax.f32 %v449_v0, 0.0 }
 0x129   :  { %v1543_v2 = vpop.f32.mrf.mxu0 }
 0x12a   :  { %v452_v3 = vadd.f32 %v1542_v1, %v2258_v59 }
 0x12b   :  { %v1544_v4 = vpop.f32.mrf.mxu0 }
 0x12c   :  { %v558_v6 = vmax.f32 %v452_v3, 0.0  ;;  %v1545_v7 = vadd.f32 %v1544_v4, %v1543_v2 }
 0x12d   :  { %v1546_v8 = vpop.f32.mrf.mxu0 }
 0x12e   :  { %v586_v9 = vpack.c.bf16 %v558_v6, %v557_v5  ;;  %v457_v12 = vadd.f32 %v1545_v7, %v2258_v59 }
 0x12f   :  { %v1547_v10 = vpop.f32.mrf.mxu0 }
 0x130   :  { %v1548_v13 = vadd.f32 %v1547_v10, %v1546_v8  ;;  %1772 = vmatmul.mubr.bf16.gmra.mxu0 %v586_v9  ;;  %v559_v21 = vmax.f32 %v457_v12, 0.0 }
 0x131   :  { %v1549_v14 = vpop.f32.mrf.mxu0 }
 0x132   :  { %v460_v15 = vadd.f32 %v1548_v13, %v2258_v59 }
 0x133   :  { %v1550_v16 = vpop.f32.mrf.mxu0 }
 0x134   :  { %v560_v22 = vmax.f32 %v460_v15, 0.0  ;;  %v1551_v23 = vadd.f32 %v1550_v16, %v1549_v14 }
 0x135   :  { %v1552_v38 = vpop.f32.mrf.mxu0 }
 0x136   :  { %v587_v41 = vpack.c.bf16 %v560_v22, %v559_v21  ;;  %v465_v45 = vadd.f32 %v1551_v23, %v2258_v59 }
 0x137   :  { %v1553_v42 = vpop.f32.mrf.mxu0 }
 0x138   :  { %v1554_v46 = vadd.f32 %v1553_v42, %v1552_v38  ;;  %1775 = vmatprep.mubr.bf16.mxu0 %v587_v41  ;;  %v561_v60 = vmax.f32 %v465_v45, 0.0 }
 0x139   :  { %v1555_v56 = vpop.f32.mrf.mxu0 }
 0x13a   :  { %v468_v57 = vadd.f32 %v1554_v46, %v2258_v59 }
 0x13b   :  { %v1556_v58 = vpop.f32.mrf.mxu0 }
 0x13c   :  { %v562_v61 = vmax.f32 %v468_v57, 0.0  ;;  %v1557_v62 = vadd.f32 %v1556_v58, %v1555_v56 }
 0x13d   :  { %v1558_v63 = vpop.f32.mrf.mxu0 }
 0x13e   :  { %v588_v0 = vpack.c.bf16 %v562_v61, %v561_v60  ;;  %v473_v2 = vadd.f32 %v1557_v62, %v2258_v59 }
 0x13f   :  { %v1559_v1 = vpop.f32.mrf.mxu0 }
 0x140   :  { %v1560_v3 = vadd.f32 %v1559_v1, %v1558_v63  ;;  %1776 = vmatmul.mubr.bf16.gmra.mxu0 %v588_v0  ;;  %v563_v7 = vmax.f32 %v473_v2, 0.0 }
 0x141   :  { %v1561_v4 = vpop.f32.mrf.mxu0 }
 0x142   :  { %v476_v5 = vadd.f32 %v1560_v3, %v2258_v59 }
 0x143   :  { %v1562_v6 = vpop.f32.mrf.mxu0 }
 0x144   :  { %v564_v8 = vmax.f32 %v476_v5, 0.0  ;;  %v1563_v9 = vadd.f32 %v1562_v6, %v1561_v4 }
 0x145   :  { %v1564_v10 = vpop.f32.mrf.mxu0 }
 0x146   :  { %v589_v12 = vpack.c.bf16 %v564_v8, %v563_v7  ;;  %v481_v14 = vadd.f32 %v1563_v9, %v2258_v59 }
 0x147   :  { %v1565_v13 = vpop.f32.mrf.mxu0 }
 0x148   :  { %v1566_v15 = vadd.f32 %v1565_v13, %v1564_v10  ;;  %1779 = vmatprep.mubr.bf16.mxu0 %v589_v12  ;;  %v565_v23 = vmax.f32 %v481_v14, 0.0 }
 0x149   :  { %v1567_v16 = vpop.f32.mrf.mxu0 }
 0x14a   :  { %v484_v21 = vadd.f32 %v1566_v15, %v2258_v59 }
 0x14b   :  { %v1568_v22 = vpop.f32.mrf.mxu0 }
 0x14c   :  { %v566_v38 = vmax.f32 %v484_v21, 0.0  ;;  %v1569_v41 = vadd.f32 %v1568_v22, %v1567_v16 }
 0x14d   :  { %v1570_v42 = vpop.f32.mrf.mxu0 }
 0x14e   :  { %v590_v45 = vpack.c.bf16 %v566_v38, %v565_v23  ;;  %v489_v57 = vadd.f32 %v1569_v41, %v2258_v59 }
 0x14f   :  { %v1571_v46 = vpop.f32.mrf.mxu0 }
 0x150   :  { %v1572_v56 = vadd.f32 %v1571_v46, %v1570_v42  ;;  %1780 = vmatmul.mubr.bf16.gmra.mxu0 %v590_v45  ;;  %v567_v63 = vmax.f32 %v489_v57, 0.0 }
 0x151   :  { %v1573_v58 = vpop.f32.mrf.mxu0 }
 0x152   :  { %v492_v60 = vadd.f32 %v1572_v56, %v2258_v59 }
 0x153   :  { %v1574_v61 = vpop.f32.mrf.mxu0 }
 0x154   :  { %v1575_v62 = vadd.f32 %v1574_v61, %v1573_v58  ;;  %v568_v0 = vmax.f32 %v492_v60, 0.0 }
 0x155   :  { %v1576_v1 = vpop.f32.mrf.mxu0 }
 0x156   :  { %v591_v2 = vpack.c.bf16 %v568_v0, %v567_v63  ;;  %v497_v4 = vadd.f32 %v1575_v62, %v2258_v59 }
 0x157   :  { %v1577_v3 = vpop.f32.mrf.mxu0 }
 0x158   :  { %v1578_v5 = vadd.f32 %v1577_v3, %v1576_v1  ;;  %1783 = vmatprep.mubr.bf16.mxu1 %v591_v2  ;;  %v569_v9 = vmax.f32 %v497_v4, 0.0 }
 0x159   :  { %v1579_v6 = vpop.f32.mrf.mxu0 }
 0x15a   :  { %v500_v7 = vadd.f32 %v1578_v5, %v2258_v59 }
 0x15b   :  { %v1580_v8 = vpop.f32.mrf.mxu0 }
 0x15c   :  { %v570_v10 = vmax.f32 %v500_v7, 0.0  ;;  %v1581_v12 = vadd.f32 %v1580_v8, %v1579_v6 }
 0x15d   :  { %v1582_v13 = vpop.f32.mrf.mxu0 }
 0x15e   :  { %v592_v14 = vpack.c.bf16 %v570_v10, %v569_v9  ;;  %v505_v16 = vadd.f32 %v1581_v12, %v2258_v59 }
 0x15f   :  { %v1583_v15 = vpop.f32.mrf.mxu0 }
 0x160   :  { %v1584_v21 = vadd.f32 %v1583_v15, %v1582_v13  ;;  %1784 = vmatmul.mubr.bf16.vlgmr.msra.gmra.mxu1 %v592_v14  ;;  %v571_v41 = vmax.f32 %v505_v16, 0.0 }
 0x161   :  { %v1585_v22 = vpop.f32.mrf.mxu0 }
 0x162   :  { %v508_v23 = vadd.f32 %v1584_v21, %v2258_v59 }
 0x163   :  { %v1586_v38 = vpop.f32.mrf.mxu0 }
 0x164   :  { %v572_v42 = vmax.f32 %v508_v23, 0.0  ;;  %v1587_v45 = vadd.f32 %v1586_v38, %v1585_v22 }
 0x165   :  { %v1588_v46 = vpop.f32.mrf.mxu0 }
 0x166   :  { %v593_v56 = vpack.c.bf16 %v572_v42, %v571_v41  ;;  %v513_v58 = vadd.f32 %v1587_v45, %v2258_v59 }
 0x167   :  { %v1589_v57 = vpop.f32.mrf.mxu0 }
 0x168   :  { %v1590_v60 = vadd.f32 %v1589_v57, %v1588_v46  ;;  %1787 = vmatprep.mubr.bf16.mxu1 %v593_v56  ;;  %v573_v0 = vmax.f32 %v513_v58, 0.0 }
 0x169   :  { %v1591_v61 = vpop.f32.mrf.mxu0 }
 0x16a   :  { %v516_v62 = vadd.f32 %v1590_v60, %v2258_v59 }
 0x16b   :  { %v1592_v63 = vpop.f32.mrf.mxu0 }
 0x16c   :  { %v574_v1 = vmax.f32 %v516_v62, 0.0  ;;  %v1593_v2 = vadd.f32 %v1592_v63, %v1591_v61 }
 0x16d   :  { %v1594_v3 = vpop.f32.mrf.mxu0 }
 0x16e   :  { %v594_v4 = vpack.c.bf16 %v574_v1, %v573_v0  ;;  %v521_v6 = vadd.f32 %v1593_v2, %v2258_v59 }
 0x16f   :  { %v1595_v5 = vpop.f32.mrf.mxu0 }
 0x170   :  { %v1596_v7 = vadd.f32 %v1595_v5, %v1594_v3  ;;  %1788 = vmatmul.mubr.bf16.gmra.mxu1 %v594_v4  ;;  %v575_v12 = vmax.f32 %v521_v6, 0.0 }
 0x171   :  { %v1597_v8 = vpop.f32.mrf.mxu0 }
 0x172   :  { %v524_v9 = vadd.f32 %v1596_v7, %v2258_v59 }
 0x173   :  { %v1598_v10 = vpop.f32.mrf.mxu0 }
 0x174   :  { %v576_v13 = vmax.f32 %v524_v9, 0.0  ;;  %v1599_v14 = vadd.f32 %v1598_v10, %v1597_v8 }
 0x175   :  { %v1600_v15 = vpop.f32.mrf.mxu0 }
 0x176   :  { %v595_v16 = vpack.c.bf16 %v576_v13, %v575_v12  ;;  %v529_v22 = vadd.f32 %v1599_v14, %v2258_v59 }
 0x177   :  { %v1601_v21 = vpop.f32.mrf.mxu0 }
 0x178   :  { %v1602_v23 = vadd.f32 %v1601_v21, %v1600_v15  ;;  %1791 = vmatprep.mubr.bf16.mxu1 %v595_v16  ;;  %v577_v45 = vmax.f32 %v529_v22, 0.0 }
 0x179   :  { %v1603_v38 = vpop.f32.mrf.mxu0 }
 0x17a   :  { %v532_v41 = vadd.f32 %v1602_v23, %v2258_v59 }
 0x17b   :  { %v1604_v42 = vpop.f32.mrf.mxu0 }
 0x17c   :  { %v578_v46 = vmax.f32 %v532_v41, 0.0  ;;  %v1605_v56 = vadd.f32 %v1604_v42, %v1603_v38 }
 0x17d   :  { %v1606_v57 = vpop.f32.mrf.mxu0 }
 0x17e   :  { %v596_v58 = vpack.c.bf16 %v578_v46, %v577_v45  ;;  %v537_v61 = vadd.f32 %v1605_v56, %v2258_v59 }
 0x17f   :  { %v1607_v60 = vpop.f32.mrf.mxu0 }
 0x180   :  { %v1608_v62 = vadd.f32 %v1607_v60, %v1606_v57  ;;  %1792 = vmatmul.mubr.bf16.gmra.mxu1 %v596_v58  ;;  %v579_v2 = vmax.f32 %v537_v61, 0.0 }
 0x181   :  { %v1609_v63 = vpop.f32.mrf.mxu0 }
 0x182   :  { %v540_v0 = vadd.f32 %v1608_v62, %v2258_v59 }
 0x183   :  { %v1610_v1 = vpop.f32.mrf.mxu0 }
 0x184   :  { %v580_v3 = vmax.f32 %v540_v0, 0.0  ;;  %v1611_v4 = vadd.f32 %v1610_v1, %v1609_v63 }
 0x185   :  { %v1612_v5 = vpop.f32.mrf.mxu0 }
 0x186   :  { %v597_v6 = vpack.c.bf16 %v580_v3, %v579_v2  ;;  %v545_v8 = vadd.f32 %v1611_v4, %v2258_v59 }
 0x187   :  { %v1613_v7 = vpop.f32.mrf.mxu0 }
 0x188   :  { %v1614_v9 = vadd.f32 %v1613_v7, %v1612_v5  ;;  %1795 = vmatprep.mubr.bf16.mxu1 %v597_v6  ;;  %v581_v12 = vmax.f32 %v545_v8, 0.0 }
 0x18a   :  { %v548_v10 = vadd.f32 %v1614_v9, %v2258_v59 }
 0x18c   :  { %v582_v13 = vmax.f32 %v548_v10, 0.0 }
 0x18e   :  { %v598_v14 = vpack.c.bf16 %v582_v13, %v581_v12 }
 0x190   :  { %1796 = vmatmul.mubr.bf16.gmra.mxu1 %v598_v14 }
 0x191   :  { %879 = vmatprep.mubr.bf16.mxu1 %v2159_v11 }
 0x1e0   :  { %v1769_v15 = vpop.f32.mrf.mxu0 }
 0x1e2   :  { %v697_v16 = vpop.f32.mrf.mxu0 }
 0x1e4   :  { %v1770_v22 = vpop.f32.mrf.mxu0 }
 0x1e6   :  { %v700_v38 = vpop.f32.mrf.mxu0 }
 0x1f0   :  { %v1773_v42 = vpop.f32.mrf.mxu0 }
 0x1f2   :  { %v713_v46 = vpop.f32.mrf.mxu0 }
 0x1f4   :  { %v1774_v57 = vpop.f32.mrf.mxu0 }
 0x1f6   :  { %v716_v59 = vpop.f32.mrf.mxu0 }
 0x200   :  { %v1777_v61 = vpop.f32.mrf.mxu0 }
 0x202   :  { %v729_v63 = vpop.f32.mrf.mxu0 }
 0x204   :  { %v1778_v11 = vpop.f32.mrf.mxu0 }
 0x205   :  { %v829_v51 = vpack.c.bf16 %v1778_v11, %v1777_v61 }
 0x206   :  { %v732_v2 = vpop.f32.mrf.mxu0 }
 0x207   :  { %v828_v49 = vpack.c.bf16 %v732_v2, %v729_v63 }
 0x210   :  { %v1781_v4 = vpop.f32.mrf.mxu0 }
 0x212   :  { %v745_v6 = vpop.f32.mrf.mxu0 }
 0x214   :  { %v1782_v9 = vpop.f32.mrf.mxu0 }
 0x215   :  { %v831_v13 = vpack.c.bf16 %v1782_v9, %v1781_v4 }
 0x216   :  { %v748_v55 = vpop.f32.mrf.mxu0 }
 0x217   :  { %v830_v53 = vpack.c.bf16 %v748_v55, %v745_v6 }
 0x220   :  { %v1785_v21 = vpop.f32.mrf.mxu1 }
 0x222   :  { %v761_v23 = vpop.f32.mrf.mxu1 }
 0x224   :  { %v1786_v41 = vpop.f32.mrf.mxu1 }
 0x225   :  { %v833_v9 = vpack.c.bf16 %v1786_v41, %v1785_v21 }
 0x226   :  { %v764_v45 = vpop.f32.mrf.mxu1 }
 0x227   :  { %v832_v55 = vpack.c.bf16 %v764_v45, %v761_v23 }
 0x230   :  { %v1789_v56 = vpop.f32.mrf.mxu1 }
 0x232   :  { %v777_v58 = vpop.f32.mrf.mxu1 }
 0x234   :  { %v1790_v60 = vpop.f32.mrf.mxu1 }
 0x235   :  { %v835_v48 = vpack.c.bf16 %v1790_v60, %v1789_v56 }
 0x236   :  { %v780_v62 = vpop.f32.mrf.mxu1 }
 0x237   :  { %v834_v4 = vpack.c.bf16 %v780_v62, %v777_v58 }
 0x240   :  { %v1793_v0 = vpop.f32.mrf.mxu1 }
 0x242   :  { %v793_v1 = vpop.f32.mrf.mxu1 }
 0x244   :  { %v1794_v3 = vpop.f32.mrf.mxu1 }
 0x245   :  { %v837_v52 = vpack.c.bf16 %v1794_v3, %v1793_v0 }
 0x246   :  { %v796_v5 = vpop.f32.mrf.mxu1 }
 0x247   :  { %v836_v50 = vpack.c.bf16 %v796_v5, %v793_v1 }
 0x250   :  { %v1797_v7 = vpop.f32.mrf.mxu1 }
 0x252   :  { %v809_v8 = vpop.f32.mrf.mxu1 }
 0x254   :  { %v1798_v10 = vpop.f32.mrf.mxu1 }
 0x255   :  { %v839_v12 = vpack.c.bf16 %v1798_v10, %v1797_v7  ;;  %v827_v7 = vpack.c.bf16 %v1774_v57, %v1773_v42 }
 0x256   :  { %v812_v14 = vpop.f32.mrf.mxu1 }
 0x257   :  { %v838_v54 = vpack.c.bf16 %v812_v14, %v809_v8  ;;  %1639 = vmatprep.subr.bf16.mxu1 %v839_v12  ;;  %v826_v8 = vpack.c.bf16 %v716_v59, %v713_v46 }
 0x258   :  { %1640 = vmatpush3.bf16.msra.mxu1 %v831_v13 }
 0x259   :  { %1641 = vmatprep.subr.bf16.mxu1 %v838_v54  ;;  %v825_v54 = vpack.c.bf16 %v1770_v22, %v1769_v15 }
 0x25c   :  { %1642 = vmatpush3.bf16.msra.mxu1 %v830_v53 }
 0x25d   :  { %1643 = vmatprep.subr.bf16.mxu1 %v837_v52  ;;  %v824_v52 = vpack.c.bf16 %v700_v38, %v697_v16 }
 0x260   :  { %1644 = vmatpush3.bf16.msra.mxu1 %v829_v51 }
 0x261   :  { %1645 = vmatprep.subr.bf16.mxu1 %v836_v50 }
 0x264   :  { %1646 = vmatpush3.bf16.msra.mxu1 %v828_v49 }
 0x265   :  { %1647 = vmatprep.subr.bf16.mxu1 %v835_v48 }
 0x268   :  { %1648 = vmatpush3.bf16.msra.mxu1 %v827_v7 }
 0x269   :  { %1649 = vmatprep.subr.bf16.mxu1 %v834_v4 }
 0x26c   :  { %1650 = vmatpush3.bf16.msra.mxu1 %v826_v8 }
 0x26d   :  { %1651 = vmatprep.subr.bf16.mxu1 %v833_v9 }
 0x270   :  { %1652 = vmatpush3.bf16.msra.mxu1 %v825_v54 }
 0x271   :  { %1653 = vmatprep.subr.bf16.mxu1 %v832_v55 }
 0x274   :  { %1654 = vmatpush3.bf16.msra.mxu1 %v824_v52 }
 0x277   :  { %880 = vmatmul.mubr.bf16.vlgmr.msra.gmra.mxu1 %v2162_v17  ;;  %v2757_v17 = vld [vmem:[#allocation12_spill] sm:$0xff] }
 0x278   :  { %887 = vmatprep.mubr.bf16.mxu1 %v2164_v18  ;;  %v2758_v18 = vld [vmem:[#allocation13_spill] sm:$0xff] }
 0x27f   :  { %888 = vmatmul.mubr.bf16.gmra.mxu1 %v2168_v19  ;;  %v2759_v19 = vld [vmem:[#allocation14_spill] sm:$0xff] }
 0x280   :  { %895 = vmatprep.mubr.bf16.mxu1 %v2170_v20  ;;  %v2760_v20 = vld [vmem:[#allocation15_spill] sm:$0xff] }
 0x287   :  { %896 = vmatmul.mubr.bf16.gmra.mxu1 %v2174_v24  ;;  %v2761_v24 = vld [vmem:[#allocation16_spill] sm:$0xff] }
 0x288   :  { %903 = vmatprep.mubr.bf16.mxu1 %v2176_v25  ;;  %v2762_v25 = vld [vmem:[#allocation17_spill] sm:$0xff] }
 0x28f   :  { %904 = vmatmul.mubr.bf16.gmra.mxu1 %v2180_v26  ;;  %v2763_v26 = vld [vmem:[#allocation18_spill] sm:$0xff] }
 0x290   :  { %911 = vmatprep.mubr.bf16.mxu1 %v2182_v27  ;;  %v2764_v27 = vld [vmem:[#allocation19_spill] sm:$0xff] }
 0x297   :  { %912 = vmatmul.mubr.bf16.gmra.mxu1 %v2186_v28  ;;  %v1008_v28 = vlaneseq }
 0x298   :  { %919 = vmatprep.mubr.bf16.mxu1 %v2188_v29 }
 0x29f   :  { %920 = vmatmul.mubr.bf16.gmra.mxu1 %v2192_v30  ;;  %v2324_v30 = vand.u32 127, %v1008_v28 }
 0x2a0   :  { %927 = vmatprep.mubr.bf16.mxu1 %v2194_v31  ;;  %v2329_v31 = vld [vmem:[%s2726_s4] ss:$0 sm:$0xff]  ;;  %s2116_s4 = smov [#allocation8]  }
 0x2a1   :  { %vm1010_vm0 = vcmp.lt.s32.totalorder %v2324_v30, 3  ;;  %s1432_s12 = sshll.u32 %s2116_s4, 4  ;;  %s1433_s12 = int_to_ptr.vmem [resolvable:$true] %s1432_s12 }
 0x2a2   :  { %s2083_s13 = scalar_lea.vmem %s1433_s12, 4096  ;;  %p2088_p2 = scmp.lt.s32.totalorder %s1433_s12, %s1433_s12 }
 0x2a3   :  { %p2084_p1 = scmp.ne.s32.totalorder %s1433_s12, %s2083_s13  ;;  %p2089_p3 = scmp.lt.s32.totalorder %s2083_s13, %s2083_s13 }
 0x2a5   :  { %p2090_p4 = por %p2089_p3, %p2088_p2 }
 0x2a7   :  { %928 = vmatmul.mubr.bf16.gmra.mxu1 %v2198_v32  ;;  %p2091_p5 = pnand %p2090_p4, %p2084_p1 }
 0x2a8   :  { %935 = vmatprep.mubr.bf16.mxu1 %v2200_v33 }
 0x2af   :  { %936 = vmatmul.mubr.bf16.gmra.mxu1 %v2204_v34 }
 0x2b0   :  { %943 = vmatprep.mubr.bf16.mxu1 %v2206_v35 }
 0x2b7   :  { %944 = vmatmul.mubr.bf16.gmra.mxu1 %v2210_v36 }
 0x2b8   :  { %951 = vmatprep.mubr.bf16.mxu1 %v2212_v37 }
 0x2bf   :  { %952 = vmatmul.mubr.bf16.gmra.mxu1 %v2216_v39 }
 0x2c0   :  { %959 = vmatprep.mubr.bf16.mxu1 %v2218_v40 }
 0x2c7   :  { %960 = vmatmul.mubr.bf16.gmra.mxu1 %v2222_v43 }
 0x2c8   :  { %967 = vmatprep.mubr.bf16.mxu1 %v2224_v44 }
 0x2cf   :  { %968 = vmatmul.mubr.bf16.gmra.mxu1 %v2228_v47 }
 0x2d0   :  { %975 = vmatprep.mubr.bf16.mxu1 %v2757_v17 }
 0x2d7   :  { %976 = vmatmul.mubr.bf16.gmra.mxu1 %v2758_v18 }
 0x2d8   :  { %983 = vmatprep.mubr.bf16.mxu1 %v2759_v19 }
 0x2df   :  { %984 = vmatmul.mubr.bf16.gmra.mxu1 %v2760_v20 }
 0x2e0   :  { %991 = vmatprep.mubr.bf16.mxu1 %v2761_v24 }
 0x2e7   :  { %992 = vmatmul.mubr.bf16.gmra.mxu1 %v2762_v25 }
 0x2e8   :  { %999 = vmatprep.mubr.bf16.mxu1 %v2763_v26 }
 0x2ef   :  { %1000 = vmatmul.mubr.bf16.gmra.mxu1 %v2764_v27 }
 0x337   :  { %v1655_v29 = vpop.f32.mrf.mxu1 }
 0x339   :  { %v1656_v32 = vpop.f32.mrf.mxu1 }
 0x33a   :  { %v1657_v33 = vadd.f32 %v1656_v32, %v1655_v29 }
 0x33b   :  { %v1658_v34 = vpop.f32.mrf.mxu1 }
 0x33c   :  { %v882_v35 = vadd.f32 %v1657_v33, %v2329_v31 }
 0x33d   :  { %v1659_v36 = vpop.f32.mrf.mxu1 }
 0x33e   :  { %v1660_v37 = vadd.f32 %v1659_v36, %v1658_v34  ;;  %v2335_v39 = vsel %vm1010_vm0, %v882_v35, -inf }
 0x33f   :  { %v1661_v40 = vpop.f32.mrf.mxu1  ;;  %1043 = vmax.xlane.f32.xlu0 %v2335_v39 }
 0x340   :  { %v885_v43 = vadd.f32 %v1660_v37, %v2329_v31 }
 0x341   :  { %v1662_v44 = vpop.f32.mrf.mxu1 }
 0x342   :  { %v1663_v47 = vadd.f32 %v1662_v44, %v1661_v40  ;;  %v2341_v48 = vsel %vm1010_vm0, %v885_v43, -inf }
 0x343   :  { %v1664_v49 = vpop.f32.mrf.mxu1  ;;  %1045 = vmax.xlane.f32.xlu0 %v2341_v48 }
 0x344   :  { %v890_v50 = vadd.f32 %v1663_v47, %v2329_v31 }
 0x345   :  { %v1665_v51 = vpop.f32.mrf.mxu1 }
 0x346   :  { %v1666_v53 = vadd.f32 %v1665_v51, %v1664_v49  ;;  %v2347_v15 = vsel %vm1010_vm0, %v890_v50, -inf }
 0x347   :  { %v1667_v16 = vpop.f32.mrf.mxu1  ;;  %1047 = vmax.xlane.f32.xlu1 %v2347_v15 }
 0x348   :  { %v893_v21 = vadd.f32 %v1666_v53, %v2329_v31 }
 0x349   :  { %v1668_v22 = vpop.f32.mrf.mxu1 }
 0x34a   :  { %v1669_v23 = vadd.f32 %v1668_v22, %v1667_v16  ;;  %v2353_v38 = vsel %vm1010_vm0, %v893_v21, -inf }
 0x34b   :  { %v1670_v41 = vpop.f32.mrf.mxu1  ;;  %1049 = vmax.xlane.f32.xlu1 %v2353_v38 }
 0x34c   :  { %v898_v42 = vadd.f32 %v1669_v23, %v2329_v31 }
 0x34d   :  { %v1671_v45 = vpop.f32.mrf.mxu1 }
 0x34e   :  { %v1672_v46 = vadd.f32 %v1671_v45, %v1670_v41  ;;  %v2359_v56 = vsel %vm1010_vm0, %v898_v42, -inf }
 0x34f   :  { %v1673_v57 = vpop.f32.mrf.mxu1  ;;  %1051 = vmax.xlane.f32.xlu0 %v2359_v56 }
 0x350   :  { %v901_v58 = vadd.f32 %v1672_v46, %v2329_v31 }
 0x351   :  { %v1674_v59 = vpop.f32.mrf.mxu1 }
 0x352   :  { %v1675_v60 = vadd.f32 %v1674_v59, %v1673_v57  ;;  %v2365_v61 = vsel %vm1010_vm0, %v901_v58, -inf }
 0x353   :  { %v1676_v62 = vpop.f32.mrf.mxu1  ;;  %1053 = vmax.xlane.f32.xlu1 %v2365_v61 }
 0x354   :  { %v906_v63 = vadd.f32 %v1675_v60, %v2329_v31 }
 0x355   :  { %v1677_v0 = vpop.f32.mrf.mxu1 }
 0x356   :  { %v1678_v11 = vadd.f32 %v1677_v0, %v1676_v62  ;;  %v2371_v1 = vsel %vm1010_vm0, %v906_v63, -inf }
 0x357   :  { %v1679_v2 = vpop.f32.mrf.mxu1  ;;  %1055 = vmax.xlane.f32.xlu0 %v2371_v1 }
 0x358   :  { %v909_v3 = vadd.f32 %v1678_v11, %v2329_v31 }
 0x359   :  { %v1680_v5 = vpop.f32.mrf.mxu1 }
 0x35a   :  { %v1681_v6 = vadd.f32 %v1680_v5, %v1679_v2  ;;  %v2377_v10 = vsel %vm1010_vm0, %v909_v3, -inf }
 0x35b   :  { %v1682_v12 = vpop.f32.mrf.mxu1  ;;  %1057 = vmax.xlane.f32.xlu1 %v2377_v10 }
 0x35c   :  { %v914_v13 = vadd.f32 %v1681_v6, %v2329_v31 }
 0x35d   :  { %v1683_v14 = vpop.f32.mrf.mxu1 }
 0x35e   :  { %v1684_v7 = vadd.f32 %v1683_v14, %v1682_v12  ;;  %v2383_v4 = vsel %vm1010_vm0, %v914_v13, -inf }
 0x35f   :  { %v1685_v8 = vpop.f32.mrf.mxu1  ;;  %1059 = vmax.xlane.f32.xlu0 %v2383_v4 }
 0x360   :  { %v917_v9 = vadd.f32 %v1684_v7, %v2329_v31 }
 0x361   :  { %v1686_v54 = vpop.f32.mrf.mxu1 }
 0x362   :  { %v1687_v55 = vadd.f32 %v1686_v54, %v1685_v8  ;;  %v2389_v52 = vsel %vm1010_vm0, %v917_v9, -inf }
 0x363   :  { %v1688_v17 = vpop.f32.mrf.mxu1  ;;  %1061 = vmax.xlane.f32.xlu1 %v2389_v52 }
 0x364   :  { %v922_v18 = vadd.f32 %v1687_v55, %v2329_v31 }
 0x365   :  { %v1689_v19 = vpop.f32.mrf.mxu1 }
 0x366   :  { %v1690_v20 = vadd.f32 %v1689_v19, %v1688_v17  ;;  %v2395_v24 = vsel %vm1010_vm0, %v922_v18, -inf }
 0x367   :  { %v1691_v25 = vpop.f32.mrf.mxu1  ;;  %1063 = vmax.xlane.f32.xlu0 %v2395_v24 }
 0x368   :  { %v925_v26 = vadd.f32 %v1690_v20, %v2329_v31 }
 0x369   :  { %v1692_v27 = vpop.f32.mrf.mxu1 }
 0x36a   :  { %v1693_v28 = vadd.f32 %v1692_v27, %v1691_v25  ;;  %v2401_v29 = vsel %vm1010_vm0, %v925_v26, -inf }
 0x36b   :  { %v1694_v32 = vpop.f32.mrf.mxu1  ;;  %1065 = vmax.xlane.f32.xlu1 %v2401_v29 }
 0x36c   :  { %v930_v33 = vadd.f32 %v1693_v28, %v2329_v31 }
 0x36d   :  { %v1695_v34 = vpop.f32.mrf.mxu1 }
 0x36e   :  { %v1696_v35 = vadd.f32 %v1695_v34, %v1694_v32  ;;  %v2407_v36 = vsel %vm1010_vm0, %v930_v33, -inf }
 0x36f   :  { %v1697_v37 = vpop.f32.mrf.mxu1  ;;  %1067 = vmax.xlane.f32.xlu0 %v2407_v36 }
 0x370   :  { %v933_v40 = vadd.f32 %v1696_v35, %v2329_v31 }
 0x371   :  { %v1698_v43 = vpop.f32.mrf.mxu1 }
 0x372   :  { %v1699_v44 = vadd.f32 %v1698_v43, %v1697_v37  ;;  %v2413_v47 = vsel %vm1010_vm0, %v933_v40, -inf }
 0x373   :  { %v1700_v49 = vpop.f32.mrf.mxu1  ;;  %1069 = vmax.xlane.f32.xlu1 %v2413_v47 }
 0x374   :  { %v938_v50 = vadd.f32 %v1699_v44, %v2329_v31 }
 0x375   :  { %v1701_v51 = vpop.f32.mrf.mxu1 }
 0x376   :  { %v1702_v53 = vadd.f32 %v1701_v51, %v1700_v49  ;;  %v2419_v16 = vsel %vm1010_vm0, %v938_v50, -inf }
 0x377   :  { %v1703_v21 = vpop.f32.mrf.mxu1  ;;  %1071 = vmax.xlane.f32.xlu0 %v2419_v16 }
 0x378   :  { %v941_v22 = vadd.f32 %v1702_v53, %v2329_v31 }
 0x379   :  { %v1704_v23 = vpop.f32.mrf.mxu1 }
 0x37a   :  { %v1705_v41 = vadd.f32 %v1704_v23, %v1703_v21  ;;  %v2425_v42 = vsel %vm1010_vm0, %v941_v22, -inf }
 0x37b   :  { %v1706_v45 = vpop.f32.mrf.mxu1  ;;  %1073 = vmax.xlane.f32.xlu1 %v2425_v42 }
 0x37c   :  { %v946_v46 = vadd.f32 %v1705_v41, %v2329_v31 }
 0x37d   :  { %v1707_v57 = vpop.f32.mrf.mxu1 }
 0x37e   :  { %v1708_v58 = vadd.f32 %v1707_v57, %v1706_v45  ;;  %v2431_v59 = vsel %vm1010_vm0, %v946_v46, -inf }
 0x37f   :  { %v1709_v60 = vpop.f32.mrf.mxu1  ;;  %1075 = vmax.xlane.f32.xlu0 %v2431_v59 }
 0x380   :  { %v949_v62 = vadd.f32 %v1708_v58, %v2329_v31 }
 0x381   :  { %v1710_v63 = vpop.f32.mrf.mxu1 }
 0x382   :  { %v1711_v0 = vadd.f32 %v1710_v63, %v1709_v60  ;;  %v2437_v11 = vsel %vm1010_vm0, %v949_v62, -inf }
 0x383   :  { %v1712_v2 = vpop.f32.mrf.mxu1  ;;  %1077 = vmax.xlane.f32.xlu1 %v2437_v11 }
 0x384   :  { %v954_v3 = vadd.f32 %v1711_v0, %v2329_v31 }
 0x385   :  { %v1713_v5 = vpop.f32.mrf.mxu1 }
 0x386   :  { %v1714_v6 = vadd.f32 %v1713_v5, %v1712_v2  ;;  %v2443_v12 = vsel %vm1010_vm0, %v954_v3, -inf }
 0x387   :  { %v1715_v13 = vpop.f32.mrf.mxu1  ;;  %1079 = vmax.xlane.f32.xlu0 %v2443_v12 }
 0x388   :  { %v957_v14 = vadd.f32 %v1714_v6, %v2329_v31 }
 0x389   :  { %v1716_v7 = vpop.f32.mrf.mxu1 }
 0x38a   :  { %v1717_v8 = vadd.f32 %v1716_v7, %v1715_v13  ;;  %v2449_v9 = vsel %vm1010_vm0, %v957_v14, -inf }
 0x38b   :  { %v1718_v54 = vpop.f32.mrf.mxu1  ;;  %1081 = vmax.xlane.f32.xlu1 %v2449_v9 }
 0x38c   :  { %v962_v55 = vadd.f32 %v1717_v8, %v2329_v31 }
 0x38d   :  { %v1719_v17 = vpop.f32.mrf.mxu1 }
 0x38e   :  { %v1720_v18 = vadd.f32 %v1719_v17, %v1718_v54  ;;  %v2455_v19 = vsel %vm1010_vm0, %v962_v55, -inf }
 0x38f   :  { %v1721_v20 = vpop.f32.mrf.mxu1  ;;  %1083 = vmax.xlane.f32.xlu0 %v2455_v19 }
 0x390   :  { %v965_v25 = vadd.f32 %v1720_v18, %v2329_v31 }
 0x391   :  { %v1722_v26 = vpop.f32.mrf.mxu1 }
 0x392   :  { %v1723_v27 = vadd.f32 %v1722_v26, %v1721_v20  ;;  %v2461_v28 = vsel %vm1010_vm0, %v965_v25, -inf }
 0x393   :  { %2765 = vst [vmem:[#allocation12_spill] sm:$0xff] %v2461_v28  ;;  %v1724_v32 = vpop.f32.mrf.mxu1  ;;  %1085 = vmax.xlane.f32.xlu1 %v2461_v28 }
 0x394   :  { %v970_v33 = vadd.f32 %v1723_v27, %v2329_v31 }
 0x395   :  { %v1725_v34 = vpop.f32.mrf.mxu1 }
 0x396   :  { %v1726_v35 = vadd.f32 %v1725_v34, %v1724_v32  ;;  %v2467_v37 = vsel %vm1010_vm0, %v970_v33, -inf }
 0x397   :  { %2766 = vst [vmem:[#allocation13_spill] sm:$0xff] %v2467_v37  ;;  %v1727_v40 = vpop.f32.mrf.mxu1  ;;  %1087 = vmax.xlane.f32.xlu0 %v2467_v37 }
 0x398   :  { %v973_v43 = vadd.f32 %v1726_v35, %v2329_v31 }
 0x399   :  { %v1728_v44 = vpop.f32.mrf.mxu1 }
 0x39a   :  { %v1729_v49 = vadd.f32 %v1728_v44, %v1727_v40  ;;  %v2473_v50 = vsel %vm1010_vm0, %v973_v43, -inf }
 0x39b   :  { %2767 = vst [vmem:[#allocation14_spill] sm:$0xff] %v2473_v50  ;;  %v1730_v51 = vpop.f32.mrf.mxu1  ;;  %1089 = vmax.xlane.f32.xlu1 %v2473_v50 }
 0x39c   :  { %v978_v53 = vadd.f32 %v1729_v49, %v2329_v31 }
 0x39d   :  { %v1731_v21 = vpop.f32.mrf.mxu1 }
 0x39e   :  { %v1732_v22 = vadd.f32 %v1731_v21, %v1730_v51  ;;  %v2479_v23 = vsel %vm1010_vm0, %v978_v53, -inf }
 0x39f   :  { %2768 = vst [vmem:[#allocation15_spill] sm:$0xff] %v2479_v23  ;;  %v1733_v41 = vpop.f32.mrf.mxu1  ;;  %1091 = vmax.xlane.f32.xlu0 %v2479_v23 }
 0x3a0   :  { %v981_v45 = vadd.f32 %v1732_v22, %v2329_v31 }
 0x3a1   :  { %v1734_v46 = vpop.f32.mrf.mxu1 }
 0x3a2   :  { %v1735_v57 = vadd.f32 %v1734_v46, %v1733_v41  ;;  %v2485_v58 = vsel %vm1010_vm0, %v981_v45, -inf }
 0x3a3   :  { %2769 = vst [vmem:[#allocation16_spill] sm:$0xff] %v2485_v58  ;;  %v1736_v60 = vpop.f32.mrf.mxu1  ;;  %1093 = vmax.xlane.f32.xlu1 %v2485_v58 }
 0x3a4   :  { %v986_v62 = vadd.f32 %v1735_v57, %v2329_v31 }
 0x3a5   :  { %v1737_v63 = vpop.f32.mrf.mxu1 }
 0x3a6   :  { %v1738_v0 = vadd.f32 %v1737_v63, %v1736_v60  ;;  %v2491_v2 = vsel %vm1010_vm0, %v986_v62, -inf }
 0x3a7   :  { %2770 = vst [vmem:[#allocation17_spill] sm:$0xff] %v2491_v2  ;;  %v1739_v3 = vpop.f32.mrf.mxu1  ;;  %1095 = vmax.xlane.f32.xlu0 %v2491_v2 }
 0x3a8   :  { %v989_v5 = vadd.f32 %v1738_v0, %v2329_v31 }
 0x3a9   :  { %v1740_v6 = vpop.f32.mrf.mxu1 }
 0x3aa   :  { %v1741_v13 = vadd.f32 %v1740_v6, %v1739_v3  ;;  %v2497_v14 = vsel %vm1010_vm0, %v989_v5, -inf }
 0x3ab   :  { %2771 = vst [vmem:[#allocation18_spill] sm:$0xff] %v2497_v14  ;;  %v1742_v7 = vpop.f32.mrf.mxu1  ;;  %1097 = vmax.xlane.f32.xlu1 %v2497_v14 }
 0x3ac   :  { %v994_v8 = vadd.f32 %v1741_v13, %v2329_v31 }
 0x3ad   :  { %v1743_v54 = vpop.f32.mrf.mxu1 }
 0x3ae   :  { %v1744_v55 = vadd.f32 %v1743_v54, %v1742_v7  ;;  %v2503_v17 = vsel %vm1010_vm0, %v994_v8, -inf }
 0x3af   :  { %2772 = vst [vmem:[#allocation19_spill] sm:$0xff] %v2503_v17  ;;  %v1745_v18 = vpop.f32.mrf.mxu1  ;;  %1099 = vmax.xlane.f32.xlu0 %v2503_v17 }
 0x3b0   :  { %v997_v20 = vadd.f32 %v1744_v55, %v2329_v31 }
 0x3b1   :  { %v1746_v25 = vpop.f32.mrf.mxu1 }
 0x3b2   :  { %v1747_v26 = vadd.f32 %v1746_v25, %v1745_v18  ;;  %v2509_v27 = vsel %vm1010_vm0, %v997_v20, -inf }
 0x3b3   :  { %2773 = vst [vmem:[#allocation20_spill] sm:$0xff] %v2509_v27  ;;  %v1748_v32 = vpop.f32.mrf.mxu1  ;;  %1101 = vmax.xlane.f32.xlu1 %v2509_v27 }
 0x3b4   :  { %v1002_v33 = vadd.f32 %v1747_v26, %v2329_v31 }
 0x3b5   :  { %v1749_v34 = vpop.f32.mrf.mxu1 }
 0x3b6   :  { %v1750_v35 = vadd.f32 %v1749_v34, %v1748_v32  ;;  %v2515_v40 = vsel %vm1010_vm0, %v1002_v33, -inf }
 0x3b7   :  { %2774 = vst [vmem:[#allocation21_spill] sm:$0xff] %v2515_v40  ;;  %1103 = vmax.xlane.f32.xlu0 %v2515_v40 }
 0x3b8   :  { %v1005_v43 = vadd.f32 %v1750_v35, %v2329_v31 }
 0x3ba   :  { %v2521_v44 = vsel %vm1010_vm0, %v1005_v43, -inf }
 0x3bb   :  { %2775 = vst [vmem:[#allocation22_spill] sm:$0xff] %v2521_v44  ;;  %1105 = vmax.xlane.f32.xlu1 %v2521_v44 }
 0x3c8   :  { %v2524_v49 = vpop.xlane.xlu0 %1043 }
 0x3c9   :  { %v1107_v51 = vsub.f32 %v2335_v39, %v2524_v49 }
 0x3cb   :  { %v1139_v53 = vmul.f32 1.442695, %v1107_v51 }
 0x3cc   :  { %v2528_v21 = vpop.xlane.xlu0 %1045 }
 0x3cd   :  { %1895 = vpow2.f32 %v1139_v53  ;;  %v1108_v22 = vsub.f32 %v2341_v48, %v2528_v21 }
 0x3cf   :  { %v1141_v41 = vmul.f32 1.442695, %v1108_v22 }
 0x3d0   :  { %v2532_v31 = vpop.xlane.xlu1 %1047 }
 0x3d1   :  { %1897 = vpow2.f32 %v1141_v41  ;;  %v1109_v30 = vsub.f32 %v2347_v15, %v2532_v31 }
 0x3d3   :  { %v1143_v45 = vmul.f32 1.442695, %v1109_v30 }
 0x3d4   :  { %v2536_v46 = vpop.xlane.xlu1 %1049 }
 0x3d5   :  { %1899 = vpow2.f32 %v1143_v45  ;;  %v1110_v57 = vsub.f32 %v2353_v38, %v2536_v46 }
 0x3d7   :  { %v1145_v60 = vmul.f32 1.442695, %v1110_v57 }
 0x3d8   :  { %v2540_v62 = vpop.xlane.xlu0 %1051 }
 0x3d9   :  { %1901 = vpow2.f32 %v1145_v60  ;;  %v1111_v63 = vsub.f32 %v2359_v56, %v2540_v62 }
 0x3da   :  { %v1896_v0 = vpop.eup %1895 }
 0x3db   :  { %v1147_v3 = vmul.f32 1.442695, %v1111_v63  ;;  %1203 = vadd.xlane.f32.xlu0 %v1896_v0 }
 0x3dc   :  { %v2544_v5 = vpop.xlane.xlu1 %1053 }
 0x3dd   :  { %1903 = vpow2.f32 %v1147_v3  ;;  %v1112_v6 = vsub.f32 %v2365_v61, %v2544_v5 }
 0x3de   :  { %v1898_v13 = vpop.eup %1897 }
 0x3df   :  { %v1149_v7 = vmul.f32 1.442695, %v1112_v6  ;;  %1205 = vadd.xlane.f32.xlu1 %v1898_v13 }
 0x3e0   :  { %v2548_v8 = vpop.xlane.xlu0 %1055 }
 0x3e1   :  { %1905 = vpow2.f32 %v1149_v7  ;;  %v1113_v54 = vsub.f32 %v2371_v1, %v2548_v8 }
 0x3e2   :  { %v1900_v55 = vpop.eup %1899 }
 0x3e3   :  { %v1151_v18 = vmul.f32 1.442695, %v1113_v54  ;;  %1207 = vadd.xlane.f32.xlu0 %v1900_v55 }
 0x3e4   :  { %v2552_v20 = vpop.xlane.xlu1 %1057 }
 0x3e5   :  { %1907 = vpow2.f32 %v1151_v18  ;;  %v1114_v25 = vsub.f32 %v2377_v10, %v2552_v20 }
 0x3e6   :  { %v1902_v26 = vpop.eup %1901 }
 0x3e7   :  { %v1153_v32 = vmul.f32 1.442695, %v1114_v25  ;;  %1209 = vadd.xlane.f32.xlu1 %v1902_v26 }
 0x3e8   :  { %v2556_v33 = vpop.xlane.xlu0 %1059 }
 0x3e9   :  { %1909 = vpow2.f32 %v1153_v32  ;;  %v1115_v34 = vsub.f32 %v2383_v4, %v2556_v33 }
 0x3ea   :  { %v1904_v35 = vpop.eup %1903 }
 0x3eb   :  { %v1155_v43 = vmul.f32 1.442695, %v1115_v34  ;;  %1211 = vadd.xlane.f32.xlu0 %v1904_v35 }
 0x3ec   :  { %v2560_v51 = vpop.xlane.xlu1 %1061 }
 0x3ed   :  { %1911 = vpow2.f32 %v1155_v43  ;;  %v1116_v53 = vsub.f32 %v2389_v52, %v2560_v51 }
 0x3ee   :  { %v1906_v22 = vpop.eup %1905 }
 0x3ef   :  { %v1157_v41 = vmul.f32 1.442695, %v1116_v53  ;;  %1213 = vadd.xlane.f32.xlu1 %v1906_v22 }
 0x3f0   :  { %v2564_v30 = vpop.xlane.xlu0 %1063 }
 0x3f1   :  { %1913 = vpow2.f32 %v1157_v41  ;;  %v1117_v45 = vsub.f32 %v2395_v24, %v2564_v30 }
 0x3f2   :  { %v1908_v57 = vpop.eup %1907 }
 0x3f3   :  { %v1159_v60 = vmul.f32 1.442695, %v1117_v45  ;;  %1215 = vadd.xlane.f32.xlu0 %v1908_v57 }
 0x3f4   :  { %v2568_v63 = vpop.xlane.xlu1 %1065 }
 0x3f5   :  { %1915 = vpow2.f32 %v1159_v60  ;;  %v1118_v0 = vsub.f32 %v2401_v29, %v2568_v63 }
 0x3f6   :  { %v1910_v3 = vpop.eup %1909 }
 0x3f7   :  { %v1161_v6 = vmul.f32 1.442695, %v1118_v0  ;;  %1217 = vadd.xlane.f32.xlu1 %v1910_v3 }
 0x3f8   :  { %v2572_v13 = vpop.xlane.xlu0 %1067 }
 0x3f9   :  { %1917 = vpow2.f32 %v1161_v6  ;;  %v1119_v7 = vsub.f32 %v2407_v36, %v2572_v13 }
 0x3fa   :  { %v1912_v54 = vpop.eup %1911 }
 0x3fb   :  { %v1163_v55 = vmul.f32 1.442695, %v1119_v7  ;;  %1219 = vadd.xlane.f32.xlu0 %v1912_v54 }
 0x3fc   :  { %v2576_v18 = vpop.xlane.xlu1 %1069 }
 0x3fd   :  { %1919 = vpow2.f32 %v1163_v55  ;;  %v1120_v25 = vsub.f32 %v2413_v47, %v2576_v18 }
 0x3fe   :  { %v1914_v26 = vpop.eup %1913 }
 0x3ff   :  { %v1165_v32 = vmul.f32 1.442695, %v1120_v25  ;;  %1221 = vadd.xlane.f32.xlu1 %v1914_v26 }
 0x400   :  { %v2580_v34 = vpop.xlane.xlu0 %1071 }
 0x401   :  { %1921 = vpow2.f32 %v1165_v32  ;;  %v1121_v35 = vsub.f32 %v2419_v16, %v2580_v34 }
 0x402   :  { %v1916_v43 = vpop.eup %1915 }
 0x403   :  { %v1167_v53 = vmul.f32 1.442695, %v1121_v35  ;;  %1223 = vadd.xlane.f32.xlu0 %v1916_v43 }
 0x404   :  { %v2584_v22 = vpop.xlane.xlu1 %1073 }
 0x405   :  { %1923 = vpow2.f32 %v1167_v53  ;;  %v1122_v41 = vsub.f32 %v2425_v42, %v2584_v22 }
 0x406   :  { %v1918_v45 = vpop.eup %1917 }
 0x407   :  { %v1169_v57 = vmul.f32 1.442695, %v1122_v41  ;;  %1225 = vadd.xlane.f32.xlu1 %v1918_v45 }
 0x408   :  { %v2588_v60 = vpop.xlane.xlu0 %1075 }
 0x409   :  { %1925 = vpow2.f32 %v1169_v57  ;;  %v1123_v0 = vsub.f32 %v2431_v59, %v2588_v60 }
 0x40a   :  { %v1920_v3 = vpop.eup %1919 }
 0x40b   :  { %v1171_v6 = vmul.f32 1.442695, %v1123_v0  ;;  %1227 = vadd.xlane.f32.xlu0 %v1920_v3 }
 0x40c   :  { %v2592_v7 = vpop.xlane.xlu1 %1077 }
 0x40d   :  { %1927 = vpow2.f32 %v1171_v6  ;;  %v1124_v54 = vsub.f32 %v2437_v11, %v2592_v7 }
 0x40e   :  { %v1922_v55 = vpop.eup %1921 }
 0x40f   :  { %v1173_v25 = vmul.f32 1.442695, %v1124_v54  ;;  %1229 = vadd.xlane.f32.xlu1 %v1922_v55 }
 0x410   :  { %v2596_v26 = vpop.xlane.xlu0 %1079 }
 0x411   :  { %1929 = vpow2.f32 %v1173_v25  ;;  %v1125_v32 = vsub.f32 %v2443_v12, %v2596_v26 }
 0x412   :  { %v1924_v35 = vpop.eup %1923 }
 0x413   :  { %v1175_v43 = vmul.f32 1.442695, %v1125_v32  ;;  %1231 = vadd.xlane.f32.xlu0 %v1924_v35 }
 0x414   :  { %v2600_v53 = vpop.xlane.xlu1 %1081 }
 0x415   :  { %1931 = vpow2.f32 %v1175_v43  ;;  %v1126_v41 = vsub.f32 %v2449_v9, %v2600_v53 }
 0x416   :  { %v1926_v45 = vpop.eup %1925 }
 0x417   :  { %v1177_v57 = vmul.f32 1.442695, %v1126_v41  ;;  %1233 = vadd.xlane.f32.xlu1 %v1926_v45 }
 0x418   :  { %v2604_v0 = vpop.xlane.xlu0 %1083 }
 0x419   :  { %1933 = vpow2.f32 %v1177_v57  ;;  %v1127_v3 = vsub.f32 %v2455_v19, %v2604_v0 }
 0x41a   :  { %v1928_v6 = vpop.eup %1927 }
 0x41b   :  { %v1179_v54 = vmul.f32 1.442695, %v1127_v3  ;;  %1235 = vadd.xlane.f32.xlu0 %v1928_v6 }
 0x41c   :  { %v2608_v55 = vpop.xlane.xlu1 %1085 }
 0x41d   :  { %1935 = vpow2.f32 %v1179_v54  ;;  %v1128_v25 = vsub.f32 %v2461_v28, %v2608_v55 }
 0x41e   :  { %v1930_v32 = vpop.eup %1929 }
 0x41f   :  { %v1181_v35 = vmul.f32 1.442695, %v1128_v25  ;;  %1237 = vadd.xlane.f32.xlu1 %v1930_v32 }
 0x420   :  { %v2612_v43 = vpop.xlane.xlu0 %1087 }
 0x421   :  { %1937 = vpow2.f32 %v1181_v35  ;;  %v1129_v41 = vsub.f32 %v2467_v37, %v2612_v43 }
 0x422   :  { %v1932_v45 = vpop.eup %1931 }
 0x423   :  { %v1183_v57 = vmul.f32 1.442695, %v1129_v41  ;;  %1239 = vadd.xlane.f32.xlu0 %v1932_v45 }
 0x424   :  { %v2616_v3 = vpop.xlane.xlu1 %1089 }
 0x425   :  { %1939 = vpow2.f32 %v1183_v57  ;;  %v1130_v6 = vsub.f32 %v2473_v50, %v2616_v3 }
 0x426   :  { %v1934_v54 = vpop.eup %1933 }
 0x427   :  { %v1185_v28 = vmul.f32 1.442695, %v1130_v6  ;;  %1241 = vadd.xlane.f32.xlu1 %v1934_v54 }
 0x428   :  { %v2620_v25 = vpop.xlane.xlu0 %1091 }
 0x429   :  { %1941 = vpow2.f32 %v1185_v28  ;;  %v1131_v32 = vsub.f32 %v2479_v23, %v2620_v25 }
 0x42a   :  { %v1936_v35 = vpop.eup %1935 }
 0x42b   :  { %v1187_v37 = vmul.f32 1.442695, %v1131_v32  ;;  %1243 = vadd.xlane.f32.xlu0 %v1936_v35 }
 0x42c   :  { %v2624_v41 = vpop.xlane.xlu1 %1093 }
 0x42d   :  { %1943 = vpow2.f32 %v1187_v37  ;;  %v1132_v45 = vsub.f32 %v2485_v58, %v2624_v41 }
 0x42e   :  { %v1938_v57 = vpop.eup %1937 }
 0x42f   :  { %v1189_v50 = vmul.f32 1.442695, %v1132_v45  ;;  %1245 = vadd.xlane.f32.xlu1 %v1938_v57 }
 0x430   :  { %v2628_v6 = vpop.xlane.xlu0 %1095 }
 0x431   :  { %1945 = vpow2.f32 %v1189_v50  ;;  %v1133_v28 = vsub.f32 %v2491_v2, %v2628_v6 }
 0x432   :  { %v1940_v54 = vpop.eup %1939 }
 0x433   :  { %v1191_v23 = vmul.f32 1.442695, %v1133_v28  ;;  %1247 = vadd.xlane.f32.xlu0 %v1940_v54 }
 0x434   :  { %v2632_v32 = vpop.xlane.xlu1 %1097 }
 0x435   :  { %1947 = vpow2.f32 %v1191_v23  ;;  %v1134_v37 = vsub.f32 %v2497_v14, %v2632_v32 }
 0x436   :  { %v1942_v35 = vpop.eup %1941 }
 0x437   :  { %v1193_v58 = vmul.f32 1.442695, %v1134_v37  ;;  %1249 = vadd.xlane.f32.xlu1 %v1942_v35 }
 0x438   :  { %v2636_v45 = vpop.xlane.xlu0 %1099 }
 0x439   :  { %1949 = vpow2.f32 %v1193_v58  ;;  %v1135_v50 = vsub.f32 %v2503_v17, %v2636_v45 }
 0x43a   :  { %v1944_v57 = vpop.eup %1943 }
 0x43b   :  { %v1195_v2 = vmul.f32 1.442695, %v1135_v50  ;;  %1251 = vadd.xlane.f32.xlu0 %v1944_v57 }
 0x43c   :  { %v2640_v28 = vpop.xlane.xlu1 %1101 }
 0x43d   :  { %1951 = vpow2.f32 %v1195_v2  ;;  %v1136_v23 = vsub.f32 %v2509_v27, %v2640_v28 }
 0x43e   :  { %v1946_v54 = vpop.eup %1945 }
 0x43f   :  { %v1197_v14 = vmul.f32 1.442695, %v1136_v23  ;;  %1253 = vadd.xlane.f32.xlu1 %v1946_v54 }
 0x440   :  { %v2644_v37 = vpop.xlane.xlu0 %1103 }
 0x441   :  { %2776 = vst [vmem:[#allocation23_spill] sm:$0xff] %v2644_v37  ;;  %1953 = vpow2.f32 %v1197_v14  ;;  %v1137_v58 = vsub.f32 %v2515_v40, %v2644_v37 }
 0x442   :  { %v1948_v35 = vpop.eup %1947 }
 0x443   :  { %v1199_v17 = vmul.f32 1.442695, %v1137_v58  ;;  %1255 = vadd.xlane.f32.xlu0 %v1948_v35 }
 0x444   :  { %v2648_v50 = vpop.xlane.xlu1 %1105 }
 0x445   :  { %2777 = vst [vmem:[#allocation24_spill] sm:$0xff] %v2648_v50  ;;  %1955 = vpow2.f32 %v1199_v17  ;;  %v1138_v2 = vsub.f32 %v2521_v44, %v2648_v50 }
 0x446   :  { %v1950_v57 = vpop.eup %1949 }
 0x447   :  { %v1201_v27 = vmul.f32 1.442695, %v1138_v2  ;;  %1257 = vadd.xlane.f32.xlu1 %v1950_v57 }
 0x449   :  { %1957 = vpow2.f32 %v1201_v27 }
 0x44a   :  { %v1952_v23 = vpop.eup %1951 }
 0x44b   :  { %1259 = vadd.xlane.f32.xlu0 %v1952_v23 }
 0x44e   :  { %v1954_v54 = vpop.eup %1953 }
 0x44f   :  { %1261 = vadd.xlane.f32.xlu1 %v1954_v54 }
 0x452   :  { %v1956_v14 = vpop.eup %1955 }
 0x453   :  { %1263 = vadd.xlane.f32.xlu0 %v1956_v14 }
 0x456   :  { %v1958_v40 = vpop.eup %1957 }
 0x457   :  { %1265 = vadd.xlane.f32.xlu1 %v1958_v40 }
 0x464   :  { %v1204_v58 = vpop.xlane.xlu0 %1203 }
 0x465   :  { %1959 = vlog2.f32 %v1204_v58 }
 0x468   :  { %v1206_v35 = vpop.xlane.xlu1 %1205 }
 0x469   :  { %1961 = vlog2.f32 %v1206_v35 }
 0x46c   :  { %v1208_v17 = vpop.xlane.xlu0 %1207 }
 0x46d   :  { %1963 = vlog2.f32 %v1208_v17 }
 0x470   :  { %v1210_v37 = vpop.xlane.xlu1 %1209 }
 0x471   :  { %1965 = vlog2.f32 %v1210_v37 }
 0x472   :  { %v1960_v44 = vpop.eup %1959 }
 0x473   :  { %v1268_v2 = vmul.f32 0.6931472, %v1960_v44 }
 0x474   :  { %v1212_v57 = vpop.xlane.xlu0 %1211 }
 0x475   :  { %v1331_v27 = vadd.f32 %v1268_v2, %v2524_v49  ;;  %1967 = vlog2.f32 %v1212_v57 }
 0x476   :  { %v1962_v23 = vpop.eup %1961 }
 0x477   :  { %v1363_v54 = vsub.f32 %v2335_v39, %v1331_v27  ;;  %v1270_v14 = vmul.f32 0.6931472, %v1962_v23 }
 0x478   :  { %v1214_v50 = vpop.xlane.xlu1 %1213 }
 0x479   :  { %1395 = vst [vmem:[#allocation8] sm:$0xff] %v1363_v54  ;;  %v1332_v40 = vadd.f32 %v1270_v14, %v2528_v21  ;;  %1969 = vlog2.f32 %v1214_v50 }
 0x47a   :  { %v1964_v58 = vpop.eup %1963 }
 0x47b   :  { %v1364_v35 = vsub.f32 %v2341_v48, %v1332_v40  ;;  %v1272_v17 = vmul.f32 0.6931472, %v1964_v58 }
 0x47c   :  { %v1216_v37 = vpop.xlane.xlu0 %1215 }
 0x47d   :  { %1396 = vst [vmem:[#allocation8 + $0x8] sm:$0xff] %v1364_v35  ;;  %v1333_v44 = vadd.f32 %v1272_v17, %v2532_v31  ;;  %1971 = vlog2.f32 %v1216_v37 }
 0x47e   :  { %v1966_v49 = vpop.eup %1965 }
 0x47f   :  { %v1365_v2 = vsub.f32 %v2347_v15, %v1333_v44  ;;  %v1274_v57 = vmul.f32 0.6931472, %v1966_v49 }
 0x480   :  { %v1218_v39 = vpop.xlane.xlu1 %1217 }
 0x481   :  { %1397 = vst [vmem:[#allocation8 + $0x10] sm:$0xff] %v1365_v2  ;;  %v1334_v27 = vadd.f32 %v1274_v57, %v2536_v46  ;;  %1973 = vlog2.f32 %v1218_v39 }
 0x482   :  { %v1968_v21 = vpop.eup %1967 }
 0x483   :  { %v1366_v50 = vsub.f32 %v2353_v38, %v1334_v27  ;;  %v1276_v23 = vmul.f32 0.6931472, %v1968_v21 }
 0x484   :  { %v1220_v48 = vpop.xlane.xlu0 %1219 }
 0x485   :  { %1398 = vst [vmem:[#allocation8 + $0x18] sm:$0xff] %v1366_v50  ;;  %v1335_v54 = vadd.f32 %v1276_v23, %v2540_v62  ;;  %1975 = vlog2.f32 %v1220_v48 }
 0x486   :  { %v1970_v31 = vpop.eup %1969 }
 0x487   :  { %v1367_v14 = vsub.f32 %v2359_v56, %v1335_v54  ;;  %v1278_v40 = vmul.f32 0.6931472, %v1970_v31 }
 0x488   :  { %v1222_v15 = vpop.xlane.xlu1 %1221 }
 0x489   :  { %1399 = vst [vmem:[#allocation8 + $0x20] sm:$0xff] %v1367_v14  ;;  %v1336_v58 = vadd.f32 %v1278_v40, %v2544_v5  ;;  %1977 = vlog2.f32 %v1222_v15 }
 0x48a   :  { %v1972_v46 = vpop.eup %1971 }
 0x48b   :  { %v1368_v35 = vsub.f32 %v2365_v61, %v1336_v58  ;;  %v1280_v17 = vmul.f32 0.6931472, %v1972_v46 }
 0x48c   :  { %v1224_v38 = vpop.xlane.xlu0 %1223 }
 0x48d   :  { %1400 = vst [vmem:[#allocation8 + $0x28] sm:$0xff] %v1368_v35  ;;  %v1337_v37 = vadd.f32 %v1280_v17, %v2548_v8  ;;  %1979 = vlog2.f32 %v1224_v38 }
 0x48e   :  { %v1974_v62 = vpop.eup %1973 }
 0x48f   :  { %v1369_v44 = vsub.f32 %v2371_v1, %v1337_v37  ;;  %v1282_v49 = vmul.f32 0.6931472, %v1974_v62 }
 0x490   :  { %v1226_v56 = vpop.xlane.xlu1 %1225 }
 0x491   :  { %1401 = vst [vmem:[#allocation8 + $0x30] sm:$0xff] %v1369_v44  ;;  %v1338_v2 = vadd.f32 %v1282_v49, %v2552_v20  ;;  %1981 = vlog2.f32 %v1226_v56 }
 0x492   :  { %v1976_v5 = vpop.eup %1975 }
 0x493   :  { %v1370_v57 = vsub.f32 %v2377_v10, %v1338_v2  ;;  %v1284_v39 = vmul.f32 0.6931472, %v1976_v5 }
 0x494   :  { %v1228_v61 = vpop.xlane.xlu0 %1227 }
 0x495   :  { %1402 = vst [vmem:[#allocation8 + $0x38] sm:$0xff] %v1370_v57  ;;  %v1339_v27 = vadd.f32 %v1284_v39, %v2556_v33  ;;  %1983 = vlog2.f32 %v1228_v61 }
 0x496   :  { %v1978_v8 = vpop.eup %1977 }
 0x497   :  { %v1371_v21 = vsub.f32 %v2383_v4, %v1339_v27  ;;  %v1286_v50 = vmul.f32 0.6931472, %v1978_v8 }
 0x498   :  { %v1230_v1 = vpop.xlane.xlu1 %1229 }
 0x499   :  { %1403 = vst [vmem:[#allocation8 + $0x40] sm:$0xff] %v1371_v21  ;;  %v1340_v23 = vadd.f32 %v1286_v50, %v2560_v51  ;;  %1985 = vlog2.f32 %v1230_v1 }
 0x49a   :  { %v1980_v20 = vpop.eup %1979 }
 0x49b   :  { %v1372_v48 = vsub.f32 %v2389_v52, %v1340_v23  ;;  %v1288_v54 = vmul.f32 0.6931472, %v1980_v20 }
 0x49c   :  { %v1232_v10 = vpop.xlane.xlu0 %1231 }
 0x49d   :  { %1404 = vst [vmem:[#allocation8 + $0x48] sm:$0xff] %v1372_v48  ;;  %v1341_v31 = vadd.f32 %v1288_v54, %v2564_v30  ;;  %1987 = vlog2.f32 %v1232_v10 }
 0x49e   :  { %v1982_v33 = vpop.eup %1981 }
 0x49f   :  { %v1373_v14 = vsub.f32 %v2395_v24, %v1341_v31  ;;  %v1290_v40 = vmul.f32 0.6931472, %v1982_v33 }
 0x4a0   :  { %v1234_v4 = vpop.xlane.xlu1 %1233 }
 0x4a1   :  { %1405 = vst [vmem:[#allocation8 + $0x50] sm:$0xff] %v1373_v14  ;;  %v1342_v15 = vadd.f32 %v1290_v40, %v2568_v63  ;;  %1989 = vlog2.f32 %v1234_v4 }
 0x4a2   :  { %v1984_v51 = vpop.eup %1983 }
 0x4a3   :  { %v1374_v58 = vsub.f32 %v2401_v29, %v1342_v15  ;;  %v1292_v46 = vmul.f32 0.6931472, %v1984_v51  ;;  %v2778_v15 = vld [vmem:[#allocation12_spill] sm:$0xff] }
 0x4a4   :  { %v1236_v52 = vpop.xlane.xlu0 %1235 }
 0x4a5   :  { %1406 = vst [vmem:[#allocation8 + $0x58] sm:$0xff] %v1374_v58  ;;  %v1343_v35 = vadd.f32 %v1292_v46, %v2572_v13  ;;  %1991 = vlog2.f32 %v1236_v52  ;;  %v2779_v52 = vld [vmem:[#allocation13_spill] sm:$0xff] }
 0x4a6   :  { %v1986_v30 = vpop.eup %1985 }
 0x4a7   :  { %v1375_v17 = vsub.f32 %v2407_v36, %v1343_v35  ;;  %v1294_v38 = vmul.f32 0.6931472, %v1986_v30 }
 0x4a8   :  { %v1238_v24 = vpop.xlane.xlu1 %1237 }
 0x4a9   :  { %1407 = vst [vmem:[#allocation8 + $0x60] sm:$0xff] %v1375_v17  ;;  %v1344_v37 = vadd.f32 %v1294_v38, %v2576_v18  ;;  %1993 = vlog2.f32 %v1238_v24  ;;  %v2780_v38 = vld [vmem:[#allocation14_spill] sm:$0xff] }
 0x4aa   :  { %v1988_v63 = vpop.eup %1987 }
 0x4ab   :  { %v1376_v62 = vsub.f32 %v2413_v47, %v1344_v37  ;;  %v1296_v44 = vmul.f32 0.6931472, %v1988_v63 }
 0x4ac   :  { %v1240_v29 = vpop.xlane.xlu0 %1239 }
 0x4ad   :  { %1408 = vst [vmem:[#allocation8 + $0x68] sm:$0xff] %v1376_v62  ;;  %v1345_v49 = vadd.f32 %v1296_v44, %v2580_v34  ;;  %1995 = vlog2.f32 %v1240_v29  ;;  %v2781_v44 = vld [vmem:[#allocation15_spill] sm:$0xff] }
 0x4ae   :  { %v1990_v13 = vpop.eup %1989 }
 0x4af   :  { %v1377_v56 = vsub.f32 %v2419_v16, %v1345_v49  ;;  %v1298_v2 = vmul.f32 0.6931472, %v1990_v13 }
 0x4b0   :  { %v1242_v36 = vpop.xlane.xlu1 %1241 }
 0x4b1   :  { %1409 = vst [vmem:[#allocation8 + $0x70] sm:$0xff] %v1377_v56  ;;  %v1346_v5 = vadd.f32 %v1298_v2, %v2584_v22  ;;  %1997 = vlog2.f32 %v1242_v36  ;;  %v2782_v2 = vld [vmem:[#allocation16_spill] sm:$0xff] }
 0x4b2   :  { %v1992_v18 = vpop.eup %1991 }
 0x4b3   :  { %v1378_v57 = vsub.f32 %v2425_v42, %v1346_v5  ;;  %v1300_v39 = vmul.f32 0.6931472, %v1992_v18 }
 0x4b4   :  { %v1244_v47 = vpop.xlane.xlu0 %1243 }
 0x4b5   :  { %1410 = vst [vmem:[#allocation8 + $0x78] sm:$0xff] %v1378_v57  ;;  %v1347_v61 = vadd.f32 %v1300_v39, %v2588_v60  ;;  %1999 = vlog2.f32 %v1244_v47  ;;  %v2783_v39 = vld [vmem:[#allocation17_spill] sm:$0xff] }
 0x4b6   :  { %v1994_v34 = vpop.eup %1993 }
 0x4b7   :  { %v1379_v27 = vsub.f32 %v2431_v59, %v1347_v61  ;;  %v1302_v8 = vmul.f32 0.6931472, %v1994_v34 }
 0x4b8   :  { %v1246_v16 = vpop.xlane.xlu1 %1245 }
 0x4b9   :  { %1411 = vst [vmem:[#allocation8 + $0x80] sm:$0xff] %v1379_v27  ;;  %v1348_v21 = vadd.f32 %v1302_v8, %v2592_v7  ;;  %2001 = vlog2.f32 %v1246_v16  ;;  %v2784_v8 = vld [vmem:[#allocation18_spill] sm:$0xff] }
 0x4ba   :  { %v1996_v22 = vpop.eup %1995 }
 0x4bb   :  { %v1380_v50 = vsub.f32 %v2437_v11, %v1348_v21  ;;  %v1304_v1 = vmul.f32 0.6931472, %v1996_v22 }
 0x4bc   :  { %v1248_v42 = vpop.xlane.xlu0 %1247 }
 0x4bd   :  { %1412 = vst [vmem:[#allocation8 + $0x88] sm:$0xff] %v1380_v50  ;;  %v1349_v23 = vadd.f32 %v1304_v1, %v2596_v26  ;;  %2003 = vlog2.f32 %v1248_v42  ;;  %v2785_v1 = vld [vmem:[#allocation19_spill] sm:$0xff] }
 0x4be   :  { %v1998_v60 = vpop.eup %1997 }
 0x4bf   :  { %v1381_v20 = vsub.f32 %v2443_v12, %v1349_v23  ;;  %v1306_v48 = vmul.f32 0.6931472, %v1998_v60 }
 0x4c0   :  { %v1250_v59 = vpop.xlane.xlu1 %1249 }
 0x4c1   :  { %1413 = vst [vmem:[#allocation8 + $0x90] sm:$0xff] %v1381_v20  ;;  %v1350_v54 = vadd.f32 %v1306_v48, %v2600_v53  ;;  %2005 = vlog2.f32 %v1250_v59  ;;  %v2786_v20 = vld [vmem:[#allocation20_spill] sm:$0xff] }
 0x4c2   :  { %v2000_v7 = vpop.eup %1999 }
 0x4c3   :  { %v1382_v10 = vsub.f32 %v2449_v9, %v1350_v54  ;;  %v1308_v31 = vmul.f32 0.6931472, %v2000_v7 }
 0x4c4   :  { %v1252_v11 = vpop.xlane.xlu0 %1251 }
 0x4c5   :  { %1414 = vst [vmem:[#allocation8 + $0x98] sm:$0xff] %v1382_v10  ;;  %v1351_v33 = vadd.f32 %v1308_v31, %v2604_v0  ;;  %2007 = vlog2.f32 %v1252_v11  ;;  %v2788_v10 = vld [vmem:[#allocation21_spill] sm:$0xff] }
 0x4c6   :  { %v2002_v26 = vpop.eup %2001 }
 0x4c7   :  { %v1383_v14 = vsub.f32 %v2455_v19, %v1351_v33  ;;  %v1310_v40 = vmul.f32 0.6931472, %v2002_v26  ;;  %v2790_v26 = vld [vmem:[#allocation22_spill] sm:$0xff] }
 0x4c8   :  { %v1254_v12 = vpop.xlane.xlu1 %1253 }
 0x4c9   :  { %1415 = vst [vmem:[#allocation8 + $0xa0] sm:$0xff] %v1383_v14  ;;  %v1352_v4 = vadd.f32 %v1310_v40, %v2608_v55  ;;  %2009 = vlog2.f32 %v1254_v12 }
 0x4ca   :  { %v2004_v53 = vpop.eup %2003 }
 0x4cb   :  { %v1384_v51 = vsub.f32 %v2778_v15, %v1352_v4  ;;  %v1312_v58 = vmul.f32 0.6931472, %v2004_v53 }
 0x4cc   :  { %v1256_v9 = vpop.xlane.xlu0 %1255 }
 0x4cd   :  { %1416 = vst [vmem:[#allocation8 + $0xa8] sm:$0xff] %v1384_v51  ;;  %v1353_v46 = vadd.f32 %v1312_v58, %v2612_v43  ;;  %2011 = vlog2.f32 %v1256_v9 }
 0x4ce   :  { %v2006_v0 = vpop.eup %2005 }
 0x4cf   :  { %v1385_v35 = vsub.f32 %v2779_v52, %v1353_v46  ;;  %v1314_v30 = vmul.f32 0.6931472, %v2006_v0 }
 0x4d0   :  { %v1258_v19 = vpop.xlane.xlu1 %1257 }
 0x4d1   :  { %1417 = vst [vmem:[#allocation8 + $0xb0] sm:$0xff] %v1385_v35  ;;  %v1354_v17 = vadd.f32 %v1314_v30, %v2616_v3  ;;  %2013 = vlog2.f32 %v1258_v19 }
 0x4d2   :  { %v2008_v55 = vpop.eup %2007 }
 0x4d3   :  { %v1386_v24 = vsub.f32 %v2780_v38, %v1354_v17  ;;  %v1316_v37 = vmul.f32 0.6931472, %v2008_v55 }
 0x4d4   :  { %v1260_v63 = vpop.xlane.xlu0 %1259 }
 0x4d5   :  { %1418 = vst [vmem:[#allocation8 + $0xb8] sm:$0xff] %v1386_v24  ;;  %v1355_v62 = vadd.f32 %v1316_v37, %v2620_v25  ;;  %2015 = vlog2.f32 %v1260_v63 }
 0x4d6   :  { %v2010_v43 = vpop.eup %2009 }
 0x4d7   :  { %v1387_v29 = vsub.f32 %v2781_v44, %v1355_v62  ;;  %v1318_v49 = vmul.f32 0.6931472, %v2010_v43 }
 0x4d8   :  { %v1262_v13 = vpop.xlane.xlu1 %1261 }
 0x4d9   :  { %1419 = vst [vmem:[#allocation8 + $0xc0] sm:$0xff] %v1387_v29  ;;  %v1356_v56 = vadd.f32 %v1318_v49, %v2624_v41  ;;  %2017 = vlog2.f32 %v1262_v13 }
 0x4da   :  { %v2012_v3 = vpop.eup %2011 }
 0x4db   :  { %v1388_v36 = vsub.f32 %v2782_v2, %v1356_v56  ;;  %v1320_v5 = vmul.f32 0.6931472, %v2012_v3 }
 0x4dc   :  { %v1264_v18 = vpop.xlane.xlu0 %1263 }
 0x4dd   :  { %1420 = vst [vmem:[#allocation8 + $0xc8] sm:$0xff] %v1388_v36  ;;  %v1357_v57 = vadd.f32 %v1320_v5, %v2628_v6  ;;  %2019 = vlog2.f32 %v1264_v18 }
 0x4de   :  { %v2014_v25 = vpop.eup %2013 }
 0x4df   :  { %v1389_v47 = vsub.f32 %v2783_v39, %v1357_v57  ;;  %v1322_v61 = vmul.f32 0.6931472, %v2014_v25 }
 0x4e0   :  { %v1266_v34 = vpop.xlane.xlu1 %1265 }
 0x4e1   :  { %1421 = vst [vmem:[#allocation8 + $0xd0] sm:$0xff] %v1389_v47  ;;  %v1358_v27 = vadd.f32 %v1322_v61, %v2632_v32  ;;  %2021 = vlog2.f32 %v1266_v34  ;;  %v2787_v32 = vld [vmem:[#allocation23_spill] sm:$0xff] }
 0x4e2   :  { %v2016_v41 = vpop.eup %2015 }
 0x4e3   :  { %v1390_v16 = vsub.f32 %v2784_v8, %v1358_v27  ;;  %v1324_v21 = vmul.f32 0.6931472, %v2016_v41 }
 0x4e5   :  { %1422 = vst [vmem:[#allocation8 + $0xd8] sm:$0xff] %v1390_v16  ;;  %v1359_v22 = vadd.f32 %v1324_v21, %v2636_v45  ;;  %v2789_v45 = vld [vmem:[#allocation24_spill] sm:$0xff] }
 0x4e6   :  { %v2018_v50 = vpop.eup %2017 }
 0x4e7   :  { %v1391_v6 = vsub.f32 %v2785_v1, %v1359_v22  ;;  %v1326_v42 = vmul.f32 0.6931472, %v2018_v50 }
 0x4e9   :  { %1423 = vst [vmem:[#allocation8 + $0xe0] sm:$0xff] %v1391_v6  ;;  %v1360_v23 = vadd.f32 %v1326_v42, %v2640_v28 }
 0x4ea   :  { %v2020_v60 = vpop.eup %2019 }
 0x4eb   :  { %v1392_v48 = vsub.f32 %v2786_v20, %v1360_v23  ;;  %v1328_v59 = vmul.f32 0.6931472, %v2020_v60 }
 0x4ed   :  { %1424 = vst [vmem:[#allocation8 + $0xe8] sm:$0xff] %v1392_v48  ;;  %v1361_v54 = vadd.f32 %v1328_v59, %v2787_v32 }
 0x4ee   :  { %v2022_v7 = vpop.eup %2021 }
 0x4ef   :  { %v1393_v31 = vsub.f32 %v2788_v10, %v1361_v54  ;;  %v1330_v11 = vmul.f32 0.6931472, %v2022_v7 }
 0x4f1   :  { %1425 = vst [vmem:[#allocation8 + $0xf0] sm:$0xff] %v1393_v31  ;;  %v1362_v33 = vadd.f32 %v1330_v11, %v2789_v45 }
 0x4f3   :  { %v1394_v14 = vsub.f32 %v2790_v26, %v1362_v33 }
 0x4f5   :  { %1426 = vst [vmem:[#allocation8 + $0xf8] sm:$0xff] %v1394_v14 }
 0x4f6   :  { %2094 = shalt.err (!%p2091_p5)
}
 0x4f7   :  { %1438 = dma.vmem_to_hbm [thread:$0]  %s1433_s12, 4096, %s2727_s5, [#allocation4], %s2113_s28, %s2113_s28, %s2114_s29  }
 0x4f8   :  { %2107 = dma.done.wait [#allocation4], 4096  }
 0x4f9   :  { %2108 = vsyncadd [#allocation4], 4294963200 }
 0x4fa   :  { %1442 = vsyncpa [#allocation3], 1 }
 0x4fb   :  { %1443 = vsyncpa [#allocation6], 1 }
 0x4fc   :  { %1444 = vsyncpa [#allocation4], 1 }

</bundles_post_ra>
